<compile_context>
chip_gen: v5e
topology: v5e:2x2
jax: 0.10.0
libtpu: 0.0.40
codegen_flags: <defaults>
</compile_context>

<pallas_src>
import functools

import jax
import jax.numpy as jnp
from jax.experimental import pallas as pl
from jax.experimental.pallas import tpu as pltpu


# ---------------------------------------------------------------------------
# Kernel: 3x3 same-pad conv (im2col, one MXU matmul) + fused PixelShuffle.
# ---------------------------------------------------------------------------
def conv3x3_pixelshuffle_kernel(a_ref, b_ref, w_ref, bias_ref, o_ref, *, r):
    # a_ref:    (1, TH, W+2, C)     input rows [i*TH, i*TH+TH) in padded coords
    # b_ref:    (1, 2,  W+2, C)     bottom halo rows [i*TH+TH, i*TH+TH+2)
    # w_ref:    (9*C, Cout)         rows k=(ky*3+kx)*C+cin; columns permuted to
    #                               pixel-shuffle order q=(i*r+j)*C+c
    # bias_ref: (1, Cout)           f32, same column permutation
    # o_ref:    (1, TH, r, W, r*C)  bf16 fused-shuffle output tile
    TH = a_ref.shape[1]
    Wp = a_ref.shape[2]
    C = a_ref.shape[3]
    W = Wp - 2
    rC = r * C

    xb = jnp.concatenate([a_ref[0], b_ref[0]], axis=0)          # (TH+2, Wp, C)
    # im2col: 9 shifted views concatenated along channels -> single large-K
    # MXU matmul (kept as one K=9*C matmul; best for the MXU-bound v5e).
    cols = [xb[dy:dy + TH, dx:dx + W, :] for dy in range(3) for dx in range(3)]
    patches = jnp.concatenate(cols, axis=-1).reshape(TH * W, 9 * C)
    acc = jnp.dot(patches, w_ref[...], preferred_element_type=jnp.float32)
    acc = acc + bias_ref[...]                                    # f32 broadcast

    # Fused PixelShuffle: output-channel group i is a lane-aligned column slice
    # (width r*C = 128 for r=2) and lands on output sub-row i; the wrapper's
    # (W, r*C)->(W*r, C) and (H, r)->(H*r) reshapes are then pure metadata.
    for i in range(r):
        yi = acc[:, i * rC:(i + 1) * rC].reshape(TH, W, rC)
        o_ref[0, :, i, :, :] = yi.astype(o_ref.dtype)


# ---------------------------------------------------------------------------
# Wrapper helpers
# ---------------------------------------------------------------------------
def _vmem_capacity_bytes() -> int:
    """Per-core VMEM capacity; conservative (v7x-sized) fallback if unknown."""
    try:
        return int(pltpu.get_tpu_info().vmem_capacity_bytes)
    except Exception:
        return 64 * 1024 * 1024


def _even_up(v: int) -> int:
    return v + (v & 1)


def _choose_tile_h(H, W, C, Cout, in_bytes, out_bytes, budget_bytes):
    """Largest even TH whose pipeline buffers AND im2col intermediates fit."""
    Wp = W + 2
    resident = 2 * (9 * C * Cout * in_bytes + Cout * 4)     # weight+bias (2-buf)
    best = 2
    for th in range(2, _even_up(H) + 1, 2):
        blocks = 2 * (th * Wp * C * in_bytes                # A band (2-buf)
                      + 2 * Wp * C * in_bytes               # B halo rows (2-buf)
                      + th * W * Cout * out_bytes)          # output tile (2-buf)
        scratch = ((th + 2) * Wp * C * in_bytes             # concatenated band
                   + 2 * th * W * 9 * C * in_bytes          # im2col views+patches
                   + th * W * Cout * 4)                     # f32 accumulator
        if blocks + scratch + resident <= budget_bytes:
            best = th
    return best


def upsample_block_forward(x_nchw, weight, bias, upscale_factor, *,
                           tile_h=None, compute_dtype=jnp.bfloat16):
    """EDSR UpsampleBlock: Conv2d(C -> C*r*r, 3x3, pad=1) + PixelShuffle(r).

    x_nchw: (N, C, H, W) f32; weight: (C*r*r, C, 3, 3); bias: (C*r*r,).
    Returns (N, C, H*r, W*r) f32 (PyTorch NCHW contract preserved).
    """
    N, C, H, W = x_nchw.shape
    r = int(upscale_factor)
    Cout = C * r * r
    rC = r * C
    assert weight.shape == (Cout, C, 3, 3)
    Wp = W + 2

    in_bytes = jnp.dtype(compute_dtype).itemsize
    out_bytes = in_bytes                                    # bf16 output
    vmem_cap = _vmem_capacity_bytes()
    if tile_h is None:
        tile_h = _choose_tile_h(H, W, C, Cout, in_bytes, out_bytes,
                                budget_bytes=int(0.6 * vmem_cap))
    TH = max(2, min(_even_up(int(tile_h)), _even_up(H)))
    nH = -(-H // TH)                                        # ceil
    TH = _even_up(-(-H // nH))                              # balance (even)
    # v7x: 2 TensorCores share the parallel grid -> keep N*nH even if possible.
    if (N * nH) % 2 == 1:
        nH2 = nH + 1
        TH2 = _even_up(-(-H // nH2))
        if (nH2 - 1) * TH2 < H:                             # no fully-junk band
            nH, TH = nH2, TH2
    H_eff = nH * TH

    # ---- Input: NCHW -> padded NHWC bf16 (one fused XLA transpose+pad+cast).
    # No overlapping-band materialization: the 1-row halo is expressed with a
    # second 2-row BlockSpec view of the same padded array.
    # TODO(synk): an NHWC end-to-end caller contract would drop this transpose
    # and the final NCHW one entirely.
    x_nhwc = jnp.transpose(x_nchw, (0, 2, 3, 1))
    x_pad = jnp.pad(x_nhwc, ((0, 0), (1, H_eff - H + 1), (1, 1), (0, 0)))
    x_pad = x_pad.astype(compute_dtype)                     # (N, H_eff+2, Wp, C)

    # ---- Weight -> (9*C, Cout), columns permuted to pixel-shuffle order.
    q = jnp.arange(Cout)
    perm = (q % C) * (r * r) + q // C                       # q=(i*r+j)*C+c -> co
    w_k = jnp.transpose(weight, (2, 3, 1, 0)).reshape(9 * C, Cout)
    w_k = w_k[:, perm].astype(compute_dtype)
    b2d = bias[perm].reshape(1, Cout).astype(jnp.float32)

    tile_vmem = (2 * (TH * Wp * C * in_bytes + 2 * Wp * C * in_bytes
                      + TH * W * Cout * out_bytes)
                 + 2 * (9 * C * Cout * in_bytes + Cout * 4)
                 + (TH + 2) * Wp * C * in_bytes
                 + 2 * TH * W * 9 * C * in_bytes
                 + TH * W * Cout * 4)
    vmem_limit = int(min(max(32 * 2**20, tile_vmem + (8 << 20)),
                         (vmem_cap * 17) // 20))

    flops = 2 * N * H_eff * W * 9 * C * Cout
    bytes_accessed = (N * nH * (TH + 2) * Wp * C * in_bytes
                      + 9 * C * Cout * in_bytes + Cout * 4
                      + N * H_eff * W * Cout * out_bytes)

    kernel = functools.partial(conv3x3_pixelshuffle_kernel, r=r)
    conv = pl.pallas_call(
        kernel,
        out_shape=jax.ShapeDtypeStruct((N, H_eff, r, W, rC), compute_dtype),
        grid=(N, nH),
        in_specs=[
            # A: TH input rows of the current band (padded coords).
            pl.BlockSpec((1, TH, Wp, C), lambda n, i: (n, i, 0, 0)),
            # B: the 2-row bottom halo, a second view of the SAME padded array.
            pl.BlockSpec((1, 2, Wp, C),
                         lambda n, i: (n, (i + 1) * (TH // 2), 0, 0)),
            # Grid-invariant weight/bias (double-buffering counted in budget).
            pl.BlockSpec((9 * C, Cout), lambda n, i: (0, 0)),
            pl.BlockSpec((1, Cout), lambda n, i: (0, 0)),
        ],
        out_specs=pl.BlockSpec((1, TH, r, W, rC),
                               lambda n, i: (n, i, 0, 0, 0)),
        compiler_params=pltpu.CompilerParams(
            dimension_semantics=("parallel", "parallel"),
            vmem_limit_bytes=vmem_limit),
        cost_estimate=pl.CostEstimate(
            flops=flops, transcendentals=0, bytes_accessed=bytes_accessed),
    )(x_pad, x_pad, w_k, b2d)

    # Fused-shuffle layout (N, H, r, W, r*C) -> NHWC is a pure-metadata reshape;
    # only the NCHW contract transpose (+ f32 cast) remains as an XLA pass.
    y = conv[:, :H]                                         # drop bottom padding
    y = y.reshape(N, H * r, W * r, C)
    return jnp.transpose(y, (0, 3, 1, 2)).astype(jnp.float32)


def _reference(x_nchw, weight, bias, r):
    """Pure-JAX f32 reference (lax conv + pixel shuffle)."""
    conv = jax.lax.conv_general_dilated(
        x_nchw, weight, window_strides=(1, 1), padding=((1, 1), (1, 1)),
        dimension_numbers=("NCHW", "OIHW", "NCHW"))
    conv = conv + bias[None, :, None, None]
    N, Cr2, H, W = conv.shape
    C = Cr2 // (r * r)
    y = conv.reshape(N, C, r, r, H, W)
    y = jnp.transpose(y, (0, 1, 4, 2, 5, 3))
    return y.reshape(N, C, H * r, W * r)


if __name__ == "__main__":
    channels = 64              # real EDSR feature width: UpsampleBlock(64, 2)
    upscale_factor = 2
    N, H, W = 2, 16, 16
    Cout = channels * upscale_factor * upscale_factor

    key = jax.random.PRNGKey(0)
    kx, kw, kb = jax.random.split(key, 3)
    x = jax.random.normal(kx, (N, channels, H, W), dtype=jnp.float32)
    weight = jax.random.normal(kw, (Cout, channels, 3, 3), dtype=jnp.float32) * 0.1
    bias = jax.random.normal(kb, (Cout,), dtype=jnp.float32) * 0.1

    # tile_h=8 -> grid (N, 2): exercises the multi-band halo path at demo size.
    fwd = jax.jit(functools.partial(
        upsample_block_forward, upscale_factor=upscale_factor, tile_h=8))
    out = jax.block_until_ready(fwd(x, weight, bias))

    ref = _reference(x, weight, bias, upscale_factor)
    assert out.shape == (N, channels, H * upscale_factor, W * upscale_factor)
    # bf16 activations/weights/output with f32 accumulation -> loose tolerance.
    assert jnp.allclose(out, ref, atol=6e-2, rtol=6e-2), (
        "mismatch vs reference, max abs err "
        f"{float(jnp.max(jnp.abs(out - ref)))}")

    print("KERNEL_OK")
</pallas_src>

<mosaic_0001>
module attributes {stable_mosaic.version = 11 : i64} {
  func.func @conv3x3_pixelshuffle_kernel(%arg0: i32, %arg1: i32, %arg2: memref<1x8x18x64xbf16, #tpu.memory_space<vmem>>, %arg3: memref<1x2x18x64xbf16, #tpu.memory_space<vmem>>, %arg4: memref<576x256xbf16, #tpu.memory_space<vmem>>, %arg5: memref<1x256xf32, #tpu.memory_space<vmem>>, %arg6: memref<1x8x2x16x128xbf16, #tpu.memory_space<vmem>>) attributes {dimension_semantics = [#tpu.dimension_semantics<parallel>, #tpu.dimension_semantics<parallel>], iteration_bounds = array<i64: 2, 2>, scalar_prefetch = 0 : i64, scratch_operands = 0 : i64, tpu.core_type = #tpu.core_type<tc>, window_params = [{transform_indices = @transform_0, window_bounds = array<i64: 1, 8, 18, 64>}, {transform_indices = @transform_1, window_bounds = array<i64: 1, 2, 18, 64>}, {pipeline_mode = #tpu.pipeline_mode<synchronous>, transform_indices = @transform_2, window_bounds = array<i64: 576, 256>}, {pipeline_mode = #tpu.pipeline_mode<synchronous>, transform_indices = @transform_3, window_bounds = array<i64: 1, 256>}, {transform_indices = @transform_4, window_bounds = array<i64: 1, 8, 2, 16, 128>}]} {
    %c0 = arith.constant 0 : index
    %c0_0 = arith.constant 0 : index
    %c0_1 = arith.constant 0 : index
    %c0_2 = arith.constant 0 : index
    %0 = vector.load %arg2[%c0, %c0_0, %c0_1, %c0_2] : memref<1x8x18x64xbf16, #tpu.memory_space<vmem>>, vector<1x8x18x64xbf16>
    %1 = vector.shape_cast %0 : vector<1x8x18x64xbf16> to vector<8x18x64xbf16>
    %c0_3 = arith.constant 0 : index
    %c0_4 = arith.constant 0 : index
    %c0_5 = arith.constant 0 : index
    %c0_6 = arith.constant 0 : index
    %2 = vector.load %arg3[%c0_3, %c0_4, %c0_5, %c0_6] : memref<1x2x18x64xbf16, #tpu.memory_space<vmem>>, vector<1x2x18x64xbf16>
    %3 = vector.shape_cast %2 : vector<1x2x18x64xbf16> to vector<2x18x64xbf16>
    %4 = tpu.concatenate %1, %3 in 0 : vector<8x18x64xbf16>, vector<2x18x64xbf16> -> vector<10x18x64xbf16>
    %5 = vector.extract_strided_slice %4 {offsets = [0, 0, 0], sizes = [8, 16, 64], strides = [1, 1, 1]} : vector<10x18x64xbf16> to vector<8x16x64xbf16>
    %6 = vector.extract_strided_slice %4 {offsets = [0, 1, 0], sizes = [8, 16, 64], strides = [1, 1, 1]} : vector<10x18x64xbf16> to vector<8x16x64xbf16>
    %7 = vector.extract_strided_slice %4 {offsets = [0, 2, 0], sizes = [8, 16, 64], strides = [1, 1, 1]} : vector<10x18x64xbf16> to vector<8x16x64xbf16>
    %8 = vector.extract_strided_slice %4 {offsets = [1, 0, 0], sizes = [8, 16, 64], strides = [1, 1, 1]} : vector<10x18x64xbf16> to vector<8x16x64xbf16>
    %9 = vector.extract_strided_slice %4 {offsets = [1, 1, 0], sizes = [8, 16, 64], strides = [1, 1, 1]} : vector<10x18x64xbf16> to vector<8x16x64xbf16>
    %10 = vector.extract_strided_slice %4 {offsets = [1, 2, 0], sizes = [8, 16, 64], strides = [1, 1, 1]} : vector<10x18x64xbf16> to vector<8x16x64xbf16>
    %11 = vector.extract_strided_slice %4 {offsets = [2, 0, 0], sizes = [8, 16, 64], strides = [1, 1, 1]} : vector<10x18x64xbf16> to vector<8x16x64xbf16>
    %12 = vector.extract_strided_slice %4 {offsets = [2, 1, 0], sizes = [8, 16, 64], strides = [1, 1, 1]} : vector<10x18x64xbf16> to vector<8x16x64xbf16>
    %13 = vector.extract_strided_slice %4 {offsets = [2, 2, 0], sizes = [8, 16, 64], strides = [1, 1, 1]} : vector<10x18x64xbf16> to vector<8x16x64xbf16>
    %14 = tpu.concatenate %5, %6, %7, %8, %9, %10, %11, %12, %13 in 2 : vector<8x16x64xbf16>, vector<8x16x64xbf16>, vector<8x16x64xbf16>, vector<8x16x64xbf16>, vector<8x16x64xbf16>, vector<8x16x64xbf16>, vector<8x16x64xbf16>, vector<8x16x64xbf16>, vector<8x16x64xbf16> -> vector<8x16x576xbf16>
    %15 = vector.shape_cast %14 : vector<8x16x576xbf16> to vector<128x576xbf16>
    %c0_7 = arith.constant 0 : index
    %c0_8 = arith.constant 0 : index
    %16 = vector.load %arg4[%c0_7, %c0_8] : memref<576x256xbf16, #tpu.memory_space<vmem>>, vector<576x256xbf16>
    %cst = arith.constant dense<0.000000e+00> : vector<128x256xf32>
    %17 = tpu.matmul %15, %16, %cst {dimension_numbers = #tpu.dot_dimension_numbers<[1], [0], [0], [1], [0, 0, 1, 1], [], []>} : vector<128x576xbf16>, vector<576x256xbf16>, vector<128x256xf32> -> vector<128x256xf32>
    %c0_9 = arith.constant 0 : index
    %c0_10 = arith.constant 0 : index
    %18 = vector.load %arg5[%c0_9, %c0_10] : memref<1x256xf32, #tpu.memory_space<vmem>>, vector<1x256xf32>
    %19 = vector.broadcast %18 : vector<1x256xf32> to vector<128x256xf32>
    %20 = arith.addf %17, %19 : vector<128x256xf32>
    %21 = vector.extract_strided_slice %20 {offsets = [0, 0], sizes = [128, 128], strides = [1, 1]} : vector<128x256xf32> to vector<128x128xf32>
    %22 = vector.shape_cast %21 : vector<128x128xf32> to vector<8x16x128xf32>
    %23 = arith.truncf %22 : vector<8x16x128xf32> to vector<8x16x128xbf16>
    %c0_11 = arith.constant 0 : index
    %c0_12 = arith.constant 0 : index
    %c0_13 = arith.constant 0 : index
    %c0_14 = arith.constant 0 : index
    %c0_15 = arith.constant 0 : index
    %24 = vector.load %arg6[%c0_11, %c0_12, %c0_13, %c0_14, %c0_15] : memref<1x8x2x16x128xbf16, #tpu.memory_space<vmem>>, vector<1x8x1x16x128xbf16>
    %25 = vector.shape_cast %24 : vector<1x8x1x16x128xbf16> to vector<8x16x128xbf16>
    %26 = vector.shape_cast %23 : vector<8x16x128xbf16> to vector<1x8x1x16x128xbf16>
    tpu.vector_store %arg6[%c0_11, %c0_12, %c0_13, %c0_14, %c0_15], %26 {strides = array<i32>} : memref<1x8x2x16x128xbf16, #tpu.memory_space<vmem>>, vector<1x8x1x16x128xbf16>,
    %27 = vector.extract_strided_slice %20 {offsets = [0, 128], sizes = [128, 128], strides = [1, 1]} : vector<128x256xf32> to vector<128x128xf32>
    %28 = vector.shape_cast %27 : vector<128x128xf32> to vector<8x16x128xf32>
    %29 = arith.truncf %28 : vector<8x16x128xf32> to vector<8x16x128xbf16>
    %c0_16 = arith.constant 0 : index
    %c0_17 = arith.constant 0 : index
    %c1 = arith.constant 1 : index
    %c0_18 = arith.constant 0 : index
    %c0_19 = arith.constant 0 : index
    %30 = vector.load %arg6[%c0_16, %c0_17, %c1, %c0_18, %c0_19] : memref<1x8x2x16x128xbf16, #tpu.memory_space<vmem>>, vector<1x8x1x16x128xbf16>
    %31 = vector.shape_cast %30 : vector<1x8x1x16x128xbf16> to vector<8x16x128xbf16>
    %32 = vector.shape_cast %29 : vector<8x16x128xbf16> to vector<1x8x1x16x128xbf16>
    tpu.vector_store %arg6[%c0_16, %c0_17, %c1, %c0_18, %c0_19], %32 {strides = array<i32>} : memref<1x8x2x16x128xbf16, #tpu.memory_space<vmem>>, vector<1x8x1x16x128xbf16>,
    return
  }
  func.func @transform_0(%arg0: i32, %arg1: i32) -> (i32, i32, i32, i32) {
    %c0_i32 = arith.constant 0 : i32
    %c0_i32_0 = arith.constant 0 : i32
    %c0_i32_1 = arith.constant 0 : i32
    return %arg0, %arg1, %c0_i32, %c0_i32_0 : i32, i32, i32, i32
  }
  func.func @transform_1(%arg0: i32, %arg1: i32) -> (i32, i32, i32, i32) {
    %c1_i32 = arith.constant 1 : i32
    %0 = arith.addi %arg1, %c1_i32 : i32
    %c4_i32 = arith.constant 4 : i32
    %1 = arith.muli %0, %c4_i32 : i32
    %c0_i32 = arith.constant 0 : i32
    %c0_i32_0 = arith.constant 0 : i32
    %c0_i32_1 = arith.constant 0 : i32
    return %arg0, %1, %c0_i32, %c0_i32_0 : i32, i32, i32, i32
  }
  func.func @transform_2(%arg0: i32, %arg1: i32) -> (i32, i32) {
    %c0_i32 = arith.constant 0 : i32
    %c0_i32_0 = arith.constant 0 : i32
    %c0_i32_1 = arith.constant 0 : i32
    return %c0_i32, %c0_i32_0 : i32, i32
  }
  func.func @transform_3(%arg0: i32, %arg1: i32) -> (i32, i32) {
    %c0_i32 = arith.constant 0 : i32
    %c0_i32_0 = arith.constant 0 : i32
    %c0_i32_1 = arith.constant 0 : i32
    return %c0_i32, %c0_i32_0 : i32, i32
  }
  func.func @transform_4(%arg0: i32, %arg1: i32) -> (i32, i32, i32, i32, i32) {
    %c0_i32 = arith.constant 0 : i32
    %c0_i32_0 = arith.constant 0 : i32
    %c0_i32_1 = arith.constant 0 : i32
    %c0_i32_2 = arith.constant 0 : i32
    return %arg0, %arg1, %c0_i32, %c0_i32_0, %c0_i32_1 : i32, i32, i32, i32, i32
  }
}

</mosaic_0001>

<bundles_post_ra>
// kernel: upsample_block_forward.1
= control target key start
LH: loop header
LB: loop body
LE: loop exit
PB: predicated region body
PF: predicated region fallthrough
CT: control target
= control target key end

     0   :  { %s2551_s15 = smov 0   ;;  %s2553_s16 = smov 0   ;;  %s3650_s0 = inlined_call_operand.vmem [shape: bf16[2,18,18,64], index: 0, kind: input, shape index: {}, may-alias: {0,1}]   ;;  %s3651_s1 = inlined_call_operand.vmem [shape: bf16[2,18,18,64], index: 1, kind: input, shape index: {}, may-alias: {0,1}]   ;;  %s3652_s2 = inlined_call_operand.vmem [shape: bf16[576,256], index: 2, kind: input, shape index: {}]   ;;  %s3653_s3 = inlined_call_operand.vmem [shape: f32[1,256], index: 3, kind: input, shape index: {}]   ;;  %s3654_s4 = inlined_call_operand.vmem [shape: bf16[2,16,2,16,128], index: 4, kind: output, shape index: {}]  }
   0x1   :  { %s2555_s17 = smov 0   ;;  %s2557_s18 = smov 0  }
   0x2   :  { %s2559_s19 = smov 0  }
   0x3 LB: > { %s23_s20 = sadd.s32 1, %s2515_s17  ;;  %s26_s21 = sadd.s32 1, %s2519_s18  ;;  %s2523_s19 = sphi %s2559_s19, %s14_s19   ;;  %s2519_s18 = sphi %s2557_s18, %s3670_s18   ;;  %s2515_s17 = sphi %s2555_s17, %s3669_s17   ;;  %s2511_s16 = sphi %s2553_s16, %s3668_s16   ;;  %s2507_s15 = sphi %s2551_s15, %s3667_s15  }
   0x4   : > { %p24_p0 = scmp.ge.s32.totalorder %s23_s20, 2  ;;  %p1867_p1 = scmp.ge.s32.totalorder %s2523_s19, 1 }
   0x5   : > { %p220_p2 = scmp.lt.s32.totalorder %s2523_s19, 5 }
   0x6   : > { %s3672_s20 = smov (%p24_p0, %s23_s20), 0  ;;  %s3674_s21 = smov (!%p24_p0, %s26_s21), %s2519_s18 }
   0x7   : > { %p221_p3 = pnand %p1867_p1, %p220_p2  ;;  %p28_p4 = scmp.ge.s32.totalorder %s3674_s21, 2 }
   0x9   : > { %s3676_s21 = smov (%p28_p4, %s3674_s21), 0  ;;  %224 = sbr.rel (%p221_p3) target bundleno = 611 (0x263), region = 36 }
   0xe   : > { %s2581_s22 = sshll.u32 %s2507_s15, 3  ;;  %p279_p5 = scmp.lt.s32.totalorder %s2511_s16, 1  ;;  %vm415_vm0 = vsmask.f32 7424  ;;  %v1975_v53 = vld [vmem:[%s3652_s2 + $0x70] sm:$0xf] }
   0xf   : > { %p281_p6 = scmp.lt.s32.totalorder %s2581_s22, 17  ;;  %s2525_s5 = smov 64   ;;  %v2271_v54 = vld [vmem:[%s3652_s2 + $0x74] sm:$0xf0]  ;;  %v1967_v56 = vld [vmem:[%s3652_s2 + $0x60] sm:$0xf] }
  0x10   : > { %s3678_s16 = smov (!%p279_p5, %s2511_s16), 1  ;;  %s2409_s6 = sadd.s32 8, %s2581_s22  ;;  %v2269_v57 = vld [vmem:[%s3652_s2 + $0x64] sm:$0xf0]  ;;  %v1976_v61 = vor.u32 %v2271_v54, %v1975_v53  ;;  %vm528_vm1 = vcmask 1046528   ;;  %vm635_vm2 = vcmask 523264  }
  0x11   : > { %s282_s23 = scalar_select %p281_p6, %s2581_s22, 17 }
  0x12   : > { %s2442_s24 = smul.u32 54, %s3678_s16  ;;  %p2654_p7 = scmp.lt.s32.totalorder %s2409_s6, 17  ;;  %1186 = vmatpush.bf16.msra.mxu0 %v1976_v61  ;;  %2425 = vmatpush.bf16.msra.mxu2 %v1976_v61  ;;  %v1935_v61 = vld [vmem:[%s3652_s2 + $0x20] sm:$0xf] }
  0x13   : > { %s2441_s25 = smul.u32 3, %s282_s23  ;;  %p312_p8 = scmp.lt.s32.totalorder %s2581_s22, 15 }
  0x14   : > { %s3680_s6 = smov (!%p2654_p7, %s2409_s6), 17  ;;  %s1875_s28 = sshll.u32 %s3678_s16, 6 }
  0x15   : > { %s285_s26 = sadd.s32 %s2442_s24, %s2441_s25  ;;  %s2443_s9 = smul.u32 3, %s3680_s6 }
  0x16   : > { %s1869_s27 = sshll.u32 %s285_s26, 2  ;;  %s3682_s22 = smov (!%p312_p8, %s2581_s22), 15 }
  0x17   : > { %s2593_s30 = scalar_lea.vmem %s3650_s0, %s1869_s27  ;;  %s2740_s29 = sadd.s32 %s2443_s9, %s2442_s24 }
  0x18   : > { %v2596_v0 = vld [vmem:[%s2593_s30 + $0x30] sm:$0xff]  ;;  %v335_v1 = vld [vmem:[%s2593_s30 + $0x38] sm:$0x1]  ;;  %v2600_v2 = vld [vmem:[%s2593_s30] sm:$0xff]  ;;  %s1872_s13 = sshll.u32 %s2740_s29, 2  ;;  %s1874_s26 = sshll.u32 %s3682_s22, 2 }
  0x19   : > { %v403_v3 = vunpack.c.l.b16 %v335_v1  ;;  %v323_v4 = vld [vmem:[%s2593_s30 + $0x8] sm:$0x1]  ;;  %v465_v5 = vshrl.u32 %v2596_v0, 16  ;;  %v467_v6 = vshll.u32 %v2596_v0, 16  ;;  %v417_v9 = vshrl.u32 %v2600_v2, 16  ;;  %v2616_v21 = vld [vmem:[%s2593_s30 + $0xc] sm:$0xff]  ;;  %s2780_s27 = scalar_lea.vmem %s3651_s1, %s1872_s13  ;;  %s316_s29 = sadd.s32 %s1875_s28, %s1874_s26 }
  0x1a   : > { %v399_v7 = vunpack.c.l.b16 %v323_v4  ;;  %v419_v10 = vshll.u32 %v2600_v2, 16  ;;  %v326_v13 = vld [vmem:[%s2593_s30 + $0x14] sm:$0x1]  ;;  %v338_v16 = vld [vmem:[%s2593_s30 + $0x44] sm:$0x1]  ;;  %v2619_v24 = vld [vmem:[%s2593_s30 + $0x3c] sm:$0xff] }
  0x1b   : > { %v2605_v8 = vpack.c.b16 %v403_v3, %v403_v3  ;;  %v469_v11 = vrot.slane %v467_v6, 1  ;;  %v400_v22 = vunpack.c.l.b16 %v326_v13  ;;  %v404_v25 = vunpack.c.l.b16 %v338_v16  ;;  %v329_v28 = vld [vmem:[%s2593_s30 + $0x20] sm:$0x1]  ;;  %v341_v34 = vld [vmem:[%s2593_s30 + $0x50] sm:$0x1]  ;;  %v2639_v40 = vld [vmem:[%s2593_s30 + $0x48] sm:$0xff] }
  0x1c   : > { %v2609_v12 = vpack.c.b16 %v399_v7, %v399_v7  ;;  %v421_v15 = vrot.slane %v419_v10, 1  ;;  %v477_v30 = vshrl.u32 %v2619_v24, 16  ;;  %v479_v31 = vshll.u32 %v2619_v24, 16  ;;  %v2645_v45 = vld [vmem:[%s2593_s30 + $0x18] sm:$0xff]  ;;  %v2039_v1 = vld [vmem:[%s3652_s2 + $0xf0] sm:$0xf] }
  0x1d   : > { %v472_v14 = vshll.u32 %v2605_v8, 16  ;;  %v470_v17 = vor.u32 %v469_v11, %v465_v5  ;;  %v2628_v29 = vpack.c.b16 %v404_v25, %v404_v25  ;;  %v2633_v32 = vpack.c.b16 %v400_v22, %v400_v22  ;;  %v344_v48 = vld [vmem:[%s2593_s30 + $0x5c] sm:$0x1]  ;;  %v2681_v59 = vld [vmem:[%s2593_s30 + $0x54] sm:$0xff]  ;;  %v1959_v11 = vld [vmem:[%s3652_s2 + $0x50] sm:$0xf] }
  0x1e   : > { %v424_v18 = vshll.u32 %v2609_v12, 16  ;;  %v422_v20 = vor.u32 %v421_v15, %v417_v9  ;;  %v431_v33 = vshll.u32 %v2616_v21, 16  ;;  %v481_v35 = vrot.slane %v479_v31, 1  ;;  %v2287_v3 = vld [vmem:[%s3652_s2 + $0xf4] sm:$0xf0]  ;;  %s1876_s7 = sshll.u32 %s316_s29, 2 }
  0x1f   : > { %v474_v19 = vrot.slane %v472_v14, 1  ;;  %v484_v36 = vshll.u32 %v2628_v29, 16  ;;  %v401_v37 = vunpack.c.l.b16 %v329_v28  ;;  %v405_v41 = vunpack.c.l.b16 %v341_v34  ;;  %v2267_v13 = vld [vmem:[%s3652_s2 + $0x54] sm:$0xf0]  ;;  %v1951_v22 = vld [vmem:[%s3652_s2 + $0x40] sm:$0xf]  ;;  %s3503_s8 = scalar_lea.vmem %s3654_s4, %s1876_s7 }
  0x20   : > { %v426_v23 = vrot.slane %v424_v18, 1  ;;  %v482_v38 = vor.u32 %v481_v35, %v477_v30  ;;  %v429_v42 = vshrl.u32 %v2616_v21, 16  ;;  %v433_v43 = vrot.slane %v431_v33, 1  ;;  %v332_v18 = vld [vmem:[%s2593_s30 + $0x2c] sm:$0x1] }
  0x21   : > { %v2622_v26 = vsel %vm415_vm0, %v470_v17, %v474_v19  ;;  %v486_v39 = vrot.slane %v484_v36, 1  ;;  %v436_v44 = vshll.u32 %v2633_v32, 16  ;;  %v2650_v47 = vpack.c.b16 %v401_v37, %v401_v37  ;;  %v2285_v25 = vld [vmem:[%s3652_s2 + $0xe4] sm:$0xf0]  ;;  %v2023_v31 = vld [vmem:[%s3652_s2 + $0xd0] sm:$0xf] }
  0x22   : > { %520 = vrot.lane.b32.xlu0 %v2622_v26, %s2525_s5  ;;  %v427_v27 = vsel %vm415_vm0, %v422_v20, %v426_v23  ;;  %v2661_v49 = vpack.c.b16 %v405_v41, %v405_v41  ;;  %v491_v50 = vshll.u32 %v2639_v40, 16  ;;  %v434_v51 = vor.u32 %v433_v43, %v429_v42  ;;  %v2031_v23 = vld [vmem:[%s3652_s2 + $0xe0] sm:$0xf]  ;;  %v2265_v28 = vld [vmem:[%s3652_s2 + $0x44] sm:$0xf0] }
  0x23   : > { %512 = vrot.lane.b32.xlu1 %v427_v27, %s2525_s5  ;;  %v2648_v46 = vsel %vm415_vm0, %v482_v38, %v486_v39  ;;  %v438_v52 = vrot.slane %v436_v44, 1  ;;  %v443_v55 = vshll.u32 %v2645_v45, 16  ;;  %v448_v58 = vshll.u32 %v2650_v47, 16  ;;  %v2283_v33 = vld [vmem:[%s3652_s2 + $0xd4] sm:$0xf0]  ;;  %v2743_v36 = vld [vmem:[%s2593_s30 + $0x24] sm:$0xff] }
  0x24   : > { %522 = vrot.lane.b32.xlu2 %v2648_v46, %s2525_s5  ;;  %v489_v60 = vshrl.u32 %v2639_v40, 16  ;;  %v493_v62 = vrot.slane %v491_v50, 1  ;;  %v496_v63 = vshll.u32 %v2661_v49, 16  ;;  %v406_v5 = vunpack.c.l.b16 %v344_v48  ;;  %v2015_v43 = vld [vmem:[%s3652_s2 + $0xc0] sm:$0xf] }
  0x25   : > { %v2696_v4 = vsel %vm415_vm0, %v434_v51, %v438_v52  ;;  %v1968_v6 = vor.u32 %v2269_v57, %v1967_v56  ;;  %v2040_v7 = vor.u32 %v2287_v3, %v2039_v1  ;;  %v441_v9 = vshrl.u32 %v2645_v45, 16  ;;  %v2281_v44 = vld [vmem:[%s3652_s2 + $0xc4] sm:$0xf0]  ;;  %v1943_v50 = vld [vmem:[%s3652_s2 + $0x30] sm:$0xf] }
  0x26   : > { %v445_v10 = vrot.slane %v443_v55, 1  ;;  %v450_v14 = vrot.slane %v448_v58, 1  ;;  %v503_v15 = vshll.u32 %v2681_v59, 16  ;;  %v494_v16 = vor.u32 %v493_v62, %v489_v60  ;;  %v2263_v51 = vld [vmem:[%s3652_s2 + $0x34] sm:$0xf0] }
  0x27   : > { %1235 = vmatpush.bf16.msra.mxu1 %v2040_v7  ;;  %v498_v17 = vrot.slane %v496_v63, 1  ;;  %2433 = vmatpush.bf16.msra.mxu3 %v2040_v7  ;;  %v2714_v19 = vpack.c.b16 %v406_v5, %v406_v5  ;;  %v1960_v20 = vor.u32 %v2267_v13, %v1959_v11  ;;  %v2032_v30 = vor.u32 %v2285_v25, %v2031_v23  ;;  %v2007_v58 = vld [vmem:[%s3652_s2 + $0xb0] sm:$0xf]  ;;  %v2279_v60 = vld [vmem:[%s3652_s2 + $0xb4] sm:$0xf0]  ;;  %v2794_v7 = vld [vmem:[%s2780_s27] sm:$0xff] }
  0x28   : > { %1187 = vmatpush.bf16.msra.mxu0 %v1968_v6  ;;  %v446_v27 = vor.u32 %v445_v10, %v441_v9  ;;  %2426 = vmatpush.bf16.msra.mxu2 %v1968_v6  ;;  %v501_v34 = vshrl.u32 %v2681_v59, 16  ;;  %v402_v37 = vunpack.c.l.b16 %v332_v18  ;;  %v2024_v38 = vor.u32 %v2283_v33, %v2023_v31  ;;  %v2261_v62 = vld [vmem:[%s3652_s2 + $0x24] sm:$0xf0]  ;;  %v1999_v10 = vld [vmem:[%s3652_s2 + $0xa0] sm:$0xf] }
  0x29   : > { %v2736_v35 = vsel %vm415_vm0, %v494_v16, %v498_v17  ;;  %v505_v39 = vrot.slane %v503_v15, 1  ;;  %v508_v41 = vshll.u32 %v2714_v19, 16  ;;  %v1952_v42 = vor.u32 %v2265_v28, %v1951_v22  ;;  %v2277_v11 = vld [vmem:[%s3652_s2 + $0xa4] sm:$0xf0]  ;;  %v1927_v13 = vld [vmem:[%s3652_s2 + $0x10] sm:$0xf] }
  0x2a   : > { %566 = vrot.lane.b32.xlu0 %v2619_v24, %s2525_s5  ;;  %v2753_v48 = vsel %vm415_vm0, %v446_v27, %v450_v14  ;;  %v2766_v52 = vpack.c.b16 %v402_v37, %v402_v37  ;;  %v455_v53 = vshll.u32 %v2743_v36, 16  ;;  %v2016_v54 = vor.u32 %v2281_v44, %v2015_v43  ;;  %v2259_v14 = vld [vmem:[%s3652_s2 + $0x14] sm:$0xf0]  ;;  %v1919_v23 = vld [vmem:[%s3652_s2] sm:$0xf] }
  0x2b   : > { %558 = vrot.lane.b32.xlu1 %v2616_v21, %s2525_s5  ;;  %1236 = vmatpush.bf16.msra.mxu1 %v2032_v30  ;;  %v506_v55 = vor.u32 %v505_v39, %v501_v34  ;;  %v510_v56 = vrot.slane %v508_v41, 1  ;;  %v1944_v57 = vor.u32 %v2263_v51, %v1943_v50  ;;  %v453_v63 = vshrl.u32 %v2743_v36, 16  ;;  %v2257_v25 = vld [vmem:[%s3652_s2 + $0x4] sm:$0xf0]  ;;  %v1983_v44 = vld [vmem:[%s3652_s2 + $0x80] sm:$0xf] }
  0x2c   : > { %568 = vrot.lane.b32.xlu2 %v2639_v40, %s2525_s5  ;;  %2434 = vmatpush.bf16.msra.mxu3 %v2032_v30  ;;  %v457_v1 = vrot.slane %v455_v53, 1  ;;  %v460_v3 = vshll.u32 %v2766_v52, 16  ;;  %v2008_v5 = vor.u32 %v2279_v60, %v2007_v58  ;;  %v1936_v9 = vor.u32 %v2261_v62, %v1935_v61  ;;  %v2273_v50 = vld [vmem:[%s3652_s2 + $0x84] sm:$0xf0]  ;;  %v2103_v51 = vld [vmem:[%s3652_s2 + $0x170] sm:$0xf] }
  0x2d   : > { %1188 = vmatpush.bf16.msra.mxu0 %v1960_v20  ;;  %2427 = vmatpush.bf16.msra.mxu2 %v1960_v20  ;;  %v2791_v6 = vsel %vm415_vm0, %v506_v55, %v510_v56  ;;  %v2000_v17 = vor.u32 %v2277_v11, %v1999_v10  ;;  %v1928_v18 = vor.u32 %v2259_v14, %v1927_v13  ;;  %v532_v20 = vrot.slane %v2616_v21, 1  ;;  %v2303_v53 = vld [vmem:[%s3652_s2 + $0x174] sm:$0xf0]  ;;  %v2167_v55 = vld [vmem:[%s3652_s2 + $0x1f0] sm:$0xf] }
  0x2e   : > { %v458_v15 = vor.u32 %v457_v1, %v453_v63  ;;  %v462_v16 = vrot.slane %v460_v3, 1  ;;  %v533_v22 = vrot.slane %v2633_v32, 1  ;;  %v1920_v28 = vor.u32 %v2257_v25, %v1919_v23  ;;  %v2319_v56 = vld [vmem:[%s3652_s2 + $0x1f4] sm:$0xf0]  ;;  %v2301_v60 = vld [vmem:[%s3652_s2 + $0x164] sm:$0xf0] }
  0x2f   : > { %1237 = vmatpush.bf16.msra.mxu1 %v2024_v38  ;;  %v535_v32 = vrot.slane %v2645_v45, 1  ;;  %v536_v31 = vrot.slane %v2650_v47, 1  ;;  %v538_v33 = vrot.slane %v2743_v36, 1  ;;  %v539_v34 = vrot.slane %v2766_v52, 1  ;;  %v2159_v62 = vld [vmem:[%s3652_s2 + $0x1e0] sm:$0xf] }
  0x30   : > { %2435 = vmatpush.bf16.msra.mxu3 %v2024_v38  ;;  %v2823_v27 = vsel %vm415_vm0, %v458_v15, %v462_v16  ;;  %v2826_v30 = vsel %vm528_vm1, %v532_v20, %v533_v22  ;;  %v541_v37 = vrot.slane %v2596_v0, 1  ;;  %v542_v38 = vrot.slane %v2605_v8, 1  ;;  %v1991_v8 = vld [vmem:[%s3652_s2 + $0x90] sm:$0xf]  ;;  %v2317_v63 = vld [vmem:[%s3652_s2 + $0x1e4] sm:$0xf0] }
  0x31   : > { %1189 = vmatpush.bf16.msra.mxu0 %v1952_v42  ;;  %2428 = vmatpush.bf16.msra.mxu2 %v1952_v42  ;;  %v2841_v39 = vsel %vm528_vm1, %v535_v32, %v536_v31  ;;  %v2844_v41 = vsel %vm528_vm1, %v538_v33, %v539_v34  ;;  %v2275_v42 = vld [vmem:[%s3652_s2 + $0x94] sm:$0xf0]  ;;  %v1984_v52 = vor.u32 %v2273_v50, %v1983_v44  ;;  %v2199_v1 = vld [vmem:[%s3652_s2 + $0x230] sm:$0xf]  ;;  %v1977_v10 = vld [vmem:[%s3652_s2 + $0x78] sm:$0xf0] }
  0x32   : > { %514 = vrot.lane.b32.xlu0 %v2696_v4, %s2525_s5  ;;  %v2847_v47 = vsel %vm528_vm1, %v541_v37, %v542_v38  ;;  %v1992_v43 = vor.u32 %v2275_v42, %v1991_v8  ;;  %v2168_v58 = vor.u32 %v2319_v56, %v2167_v55  ;;  %v2160_v3 = vor.u32 %v2317_v63, %v2159_v62  ;;  %v2087_v14 = vld [vmem:[%s3652_s2 + $0x150] sm:$0xf]  ;;  %v2299_v15 = vld [vmem:[%s3652_s2 + $0x154] sm:$0xf0]  ;;  %v2268_v25 = vld [vmem:[%s3652_s2 + $0x64] sm:$0xf] }
  0x33   : > { %560 = vrot.lane.b32.xlu1 %v2645_v45, %s2525_s5  ;;  %1238 = vmatpush.bf16.msra.mxu1 %v2016_v54  ;;  %v2088_v16 = vor.u32 %v2299_v15, %v2087_v14  ;;  %v2151_v22 = vld [vmem:[%s3652_s2 + $0x1d0] sm:$0xf]  ;;  %v2315_v23 = vld [vmem:[%s3652_s2 + $0x1d4] sm:$0xf0]  ;;  %v547_v32 = vrot.slane %v2639_v40, 1  ;;  %v548_v31 = vrot.slane %v2661_v49, 1 }
  0x34   : > { %524 = vrot.lane.b32.xlu2 %v2736_v35, %s2525_s5  ;;  %2436 = vmatpush.bf16.msra.mxu3 %v2016_v54  ;;  %v2104_v54 = vor.u32 %v2303_v53, %v2103_v51  ;;  %v2079_v33 = vld [vmem:[%s3652_s2 + $0x140] sm:$0xf]  ;;  %v2297_v37 = vld [vmem:[%s3652_s2 + $0x144] sm:$0xf0]  ;;  %v529_v50 = vrot.slane %v2600_v2, 1  ;;  %v530_v51 = vrot.slane %v2609_v12, 1 }
  0x35   : > { %1190 = vmatpush.bf16.msra.mxu0 %v1944_v57  ;;  %2429 = vmatpush.bf16.msra.mxu2 %v1944_v57  ;;  %v2095_v57 = vld [vmem:[%s3652_s2 + $0x160] sm:$0xf]  ;;  %v2937_v38 = vsel %vm528_vm1, %v547_v32, %v548_v31  ;;  %v2080_v8 = vor.u32 %v2297_v37, %v2079_v33  ;;  %v2266_v12 = vld [vmem:[%s3652_s2 + $0x54] sm:$0xf]  ;;  %v1961_v55 = vld [vmem:[%s3652_s2 + $0x58] sm:$0xf0] }
  0x36   : > { %v2096_v61 = vor.u32 %v2301_v60, %v2095_v57  ;;  %v2191_v53 = vld [vmem:[%s3652_s2 + $0x220] sm:$0xf]  ;;  %v2071_v60 = vld [vmem:[%s3652_s2 + $0x130] sm:$0xf]  ;;  %v531_v63 = vsel %vm528_vm1, %v529_v50, %v530_v51  ;;  %v1953_v15 = vld [vmem:[%s3652_s2 + $0x48] sm:$0xf0] }
  0x37   : > { %1239 = vmatpush.bf16.msra.mxu1 %v2008_v5  ;;  %v2183_v37 = vld [vmem:[%s3652_s2 + $0x210] sm:$0xf] }
  0x38   : > { %2437 = vmatpush.bf16.msra.mxu3 %v2008_v5  ;;  %v2327_v5 = vld [vmem:[%s3652_s2 + $0x234] sm:$0xf0] }
  0x39   : > { %1191 = vmatpush.bf16.msra.mxu0 %v1936_v9  ;;  %2430 = vmatpush.bf16.msra.mxu2 %v1936_v9  ;;  %v2270_v9 = vld [vmem:[%s3652_s2 + $0x74] sm:$0xf]  ;;  %v2200_v11 = vor.u32 %v2327_v5, %v2199_v1 }
  0x3a   : > { %570 = vrot.lane.b32.xlu0 %v2681_v59, %s2525_s5  ;;  %v1980_v13 = vor.u32 %v2270_v9, %v1977_v10  ;;  %v2135_v10 = vld [vmem:[%s3652_s2 + $0x1b0] sm:$0xf] }
  0x3b   : > { %516 = vrot.lane.b32.xlu1 %v2753_v48, %s2525_s5  ;;  %1240 = vmatpush.bf16.msra.mxu1 %v2000_v17 }
  0x3c   : > { %562 = vrot.lane.b32.xlu2 %v2743_v36, %s2525_s5  ;;  %2438 = vmatpush.bf16.msra.mxu3 %v2000_v17  ;;  %v544_v17 = vrot.slane %v2619_v24, 1 }
  0x3d   : > { %1192 = vmatpush.bf16.msra.mxu0 %v1928_v18  ;;  %2431 = vmatpush.bf16.msra.mxu2 %v1928_v18  ;;  %v545_v18 = vrot.slane %v2628_v29, 1  ;;  %v2152_v29 = vor.u32 %v2315_v23, %v2151_v22  ;;  %v2293_v23 = vld [vmem:[%s3652_s2 + $0x124] sm:$0xf0] }
  0x3f   : > { %1241 = vmatpush.bf16.msra.mxu1 %v1992_v43  ;;  %v2912_v20 = vsel %vm528_vm1, %v544_v17, %v545_v18  ;;  %v551_v17 = vrot.slane %v2714_v19, 1  ;;  %v2063_v18 = vld [vmem:[%s3652_s2 + $0x120] sm:$0xf] }
  0x40   : > { %2439 = vmatpush.bf16.msra.mxu3 %v1992_v43 }
  0x41   : > { %1193 = vmatpush.bf16.msra.mxu0 %v1920_v28  ;;  %2432 = vmatpush.bf16.msra.mxu2 %v1920_v28  ;;  %v1969_v28 = vld [vmem:[%s3652_s2 + $0x68] sm:$0xf0] }
  0x42   : > { %526 = vrot.lane.b32.xlu0 %v2791_v6, %s2525_s5  ;;  %v1972_v34 = vor.u32 %v2268_v25, %v1969_v28 }
  0x43   : > { %572 = vrot.lane.b32.xlu1 %v2794_v7, %s2525_s5  ;;  %1242 = vmatpush.bf16.msra.mxu1 %v1984_v52 }
  0x44   : > { %518 = vrot.lane.b32.xlu2 %v2823_v27, %s2525_s5  ;;  %2440 = vmatpush.bf16.msra.mxu3 %v1984_v52  ;;  %v2143_v52 = vld [vmem:[%s3652_s2 + $0x1c0] sm:$0xf] }
  0x45   : > { %1284 = vmatpush.bf16.msrb.mxu2 %v2104_v54  ;;  %1386 = vmatpush.bf16.msrb.mxu0 %v2200_v11  ;;  %v2311_v11 = vld [vmem:[%s3652_s2 + $0x1b4] sm:$0xf0] }
  0x46   : > { %v2136_v14 = vor.u32 %v2311_v11, %v2135_v10 }
  0x47   : > { %1431 = vmatpush.bf16.msrb.mxu1 %v1980_v13  ;;  %v2264_v13 = vld [vmem:[%s3652_s2 + $0x44] sm:$0xf] }
  0x48   : > { %1333 = vmatpush.bf16.msrb.mxu3 %v2168_v58  ;;  %v1964_v58 = vor.u32 %v2266_v12, %v1961_v55  ;;  %v1956_v22 = vor.u32 %v2264_v13, %v1953_v15  ;;  %v2289_v13 = vld [vmem:[%s3652_s2 + $0x104] sm:$0xf0] }
  0x49   : > { %1285 = vmatpush.bf16.msrb.mxu2 %v2096_v61  ;;  %v2295_v61 = vld [vmem:[%s3652_s2 + $0x134] sm:$0xf0]  ;;  %v2321_v15 = vld [vmem:[%s3652_s2 + $0x204] sm:$0xf0] }
  0x4a   : > { %564 = vrot.lane.b32.xlu0 %v2596_v0, %s2525_s5  ;;  %v2072_v62 = vor.u32 %v2295_v61, %v2071_v60  ;;  %v2307_v60 = vld [vmem:[%s3652_s2 + $0x194] sm:$0xf0] }
  0x4b   : > { %592 = vrot.lane.b32.xlu1 %v2826_v30, %s2525_s5  ;;  %1432 = vmatpush.bf16.msrb.mxu1 %v1972_v34  ;;  %v2309_v34 = vld [vmem:[%s3652_s2 + $0x1a4] sm:$0xf0] }
  0x4c   : > { %594 = vrot.lane.b32.xlu2 %v2841_v39, %s2525_s5  ;;  %1334 = vmatpush.bf16.msrb.mxu3 %v2160_v3 }
  0x4d   : > { %1286 = vmatpush.bf16.msrb.mxu2 %v2088_v16  ;;  %v550_v16 = vrot.slane %v2681_v59, 1 }
  0x4f   : > { %1433 = vmatpush.bf16.msrb.mxu1 %v1964_v58  ;;  %v3008_v25 = vsel %vm528_vm1, %v550_v16, %v551_v17  ;;  %v2119_v58 = vld [vmem:[%s3652_s2 + $0x190] sm:$0xf] }
  0x50   : > { %1335 = vmatpush.bf16.msrb.mxu3 %v2152_v29  ;;  %v2064_v29 = vor.u32 %v2293_v23, %v2063_v18  ;;  %v2120_v61 = vor.u32 %v2307_v60, %v2119_v58  ;;  %v350_v23 = vld [vmem:[%s2780_s27 + $0x14] sm:$0x1]  ;;  %v2041_v58 = vld [vmem:[%s3652_s2 + $0xf8] sm:$0xf0] }
  0x51   : > { %1287 = vmatpush.bf16.msrb.mxu2 %v2080_v8  ;;  %v2323_v8 = vld [vmem:[%s3652_s2 + $0x214] sm:$0xf0] }
  0x52   : > { %596 = vrot.lane.b32.xlu0 %v2844_v41, %s2525_s5  ;;  %v2184_v50 = vor.u32 %v2323_v8, %v2183_v37 }
  0x53   : > { %598 = vrot.lane.b32.xlu1 %v2847_v47, %s2525_s5  ;;  %1434 = vmatpush.bf16.msrb.mxu1 %v1956_v22  ;;  %v3089_v22 = vld [vmem:[%s2780_s27 + $0xc] sm:$0xff] }
  0x54   : > { %600 = vrot.lane.b32.xlu2 %v2912_v20, %s2525_s5 }
  0x55   : > { %1288 = vmatpush.bf16.msrb.mxu2 %v2072_v62  ;;  %v1937_v62 = vld [vmem:[%s3652_s2 + $0x28] sm:$0xf0] }
  0x59   : > { %1289 = vmatpush.bf16.msrb.mxu2 %v2064_v29 }
  0x5a   : > { %602 = vrot.lane.b32.xlu0 %v2937_v38, %s2525_s5 }
  0x5b   : > { %604 = vrot.lane.b32.xlu1 %v3008_v25, %s2525_s5 }
  0x7e   : > { %v523_v56 = vpop.permute.xlu2 %522 }
  0x7f   : > { %v3012_v28 = vsel %vm635_vm2, %v2619_v24, %v523_v56  ;;  %v2127_v24 = vld [vmem:[%s3652_s2 + $0x1a0] sm:$0xf] }
  0x86   : > { %v569_v32 = vpop.permute.xlu2 %568 }
  0x8e   : > { %v525_v56 = vpop.permute.xlu2 %524 }
  0x8f   : > { %v3094_v29 = vsel %vm635_vm2, %v2639_v40, %v525_v56  ;;  %v1929_v40 = vld [vmem:[%s3652_s2 + $0x18] sm:$0xf0]  ;;  %v2286_v56 = vld [vmem:[%s3652_s2 + $0xf4] sm:$0xf] }
  0x94   : > { %v521_v49 = vpop.permute.xlu0 %520 }
  0x95   : > { %v2943_v42 = vsel %vm635_vm2, %v2596_v0, %v521_v49  ;;  %v513_v43 = vpop.permute.xlu1 %512  ;;  %v2313_v0 = vld [vmem:[%s3652_s2 + $0x1c4] sm:$0xf0]  ;;  %v2262_v49 = vld [vmem:[%s3652_s2 + $0x34] sm:$0xf] }
  0x96   : > { %v2947_v44 = vsel %vm635_vm2, %v2600_v2, %v513_v43  ;;  %1214 = vmatmul.bf16.vlgmr.msra.gmra.mxu2 %v2943_v42  ;;  %v2144_v54 = vor.u32 %v2313_v0, %v2143_v52  ;;  %v2325_v2 = vld [vmem:[%s3652_s2 + $0x224] sm:$0xf0]  ;;  %v1945_v43 = vld [vmem:[%s3652_s2 + $0x38] sm:$0xf0]  ;;  %v2055_v52 = vld [vmem:[%s3652_s2 + $0x110] sm:$0xf] }
  0x97   : > { %1194 = vmatmul.bf16.vlgmr.msra.gmra.mxu0 %v2947_v44  ;;  %v2192_v57 = vor.u32 %v2325_v2, %v2191_v53  ;;  %v1948_v51 = vor.u32 %v2262_v49, %v1945_v43  ;;  %v2291_v0 = vld [vmem:[%s3652_s2 + $0x114] sm:$0xf0]  ;;  %v347_v2 = vld [vmem:[%s2780_s27 + $0x8] sm:$0x1]  ;;  %v617_v49 = vshrl.u32 %v3089_v22, 16 }
  0x98   : > { %1336 = vmatpush.bf16.msrb.mxu3 %v2144_v54  ;;  %v2056_v53 = vor.u32 %v2291_v0, %v2055_v52  ;;  %v3048_v54 = vsel %vm635_vm2, %v2912_v20, %v569_v32  ;;  %v575_v55 = vunpack.c.l.b16 %v347_v2  ;;  %v614_v32 = vunpack.c.l.b16 %v350_v23  ;;  %v2256_v0 = vld [vmem:[%s3652_s2 + $0x4] sm:$0xf] }
  0x99   : > { %1387 = vmatpush.bf16.msrb.mxu0 %v2192_v57  ;;  %1435 = vmatpush.bf16.msrb.mxu1 %v1948_v51 }
  0x9a   : > { %1290 = vmatpush.bf16.msrb.mxu2 %v2056_v53  ;;  %v3056_v57 = vpack.c.b16 %v575_v55, %v575_v55  ;;  %v3109_v37 = vpack.c.b16 %v614_v32, %v614_v32  ;;  %v1921_v53 = vld [vmem:[%s3652_s2 + $0x8] sm:$0xf0] }
  0x9b   : > { %v1924_v55 = vor.u32 %v2256_v0, %v1921_v53  ;;  %v2300_v53 = vld [vmem:[%s3652_s2 + $0x164] sm:$0xf] }
  0x9c   : > { %v567_v1 = vpop.permute.xlu0 %566  ;;  %1337 = vmatpush.bf16.msrb.mxu3 %v2136_v14  ;;  %v2175_v14 = vld [vmem:[%s3652_s2 + $0x200] sm:$0xf]  ;;  %v624_v52 = vshll.u32 %v3109_v37, 16 }
  0x9d   : > { %v559_v3 = vpop.permute.xlu1 %558  ;;  %v2980_v5 = vsel %vm635_vm2, %v2847_v47, %v567_v1  ;;  %1388 = vmatpush.bf16.msrb.mxu0 %v2184_v50  ;;  %v590_v1 = vrot.slane %v3056_v57, 1  ;;  %v2176_v18 = vor.u32 %v2321_v15, %v2175_v14  ;;  %v563_v50 = vpop.permute.xlu2 %562  ;;  %v2302_v14 = vld [vmem:[%s3652_s2 + $0x174] sm:$0xf]  ;;  %v2105_v15 = vld [vmem:[%s3652_s2 + $0x178] sm:$0xf0] }
  0x9e   : > { %v2983_v9 = vsel %vm635_vm2, %v531_v63, %v559_v3  ;;  %1263 = vmatmul.bf16.vlgmr.msra.gmra.mxu3 %v2980_v5  ;;  %v589_v63 = vrot.slane %v2794_v7, 1  ;;  %v2047_v3 = vld [vmem:[%s3652_s2 + $0x100] sm:$0xf]  ;;  %v626_v60 = vrot.slane %v624_v52, 1 }
  0x9f   : > { %1243 = vmatmul.bf16.vlgmr.msra.gmra.mxu1 %v2983_v9  ;;  %v2048_v17 = vor.u32 %v2289_v13, %v2047_v3  ;;  %v578_v3 = vshrl.u32 %v2794_v7, 16 }
  0xa0   : > { %v3086_v16 = vsel %vm528_vm1, %v589_v63, %v590_v1  ;;  %v3140_v63 = vsel %vm635_vm2, %v2841_v39, %v563_v50  ;;  %v580_v1 = vshll.u32 %v2794_v7, 16 }
  0xa1   : > { %606 = vrot.lane.b32.xlu0 %v3086_v16, %s2525_s5  ;;  %1291 = vmatpush.bf16.msrb.mxu2 %v2048_v17  ;;  %v2108_v17 = vor.u32 %v2302_v14, %v2105_v15 }
  0xa2   : > { %1389 = vmatpush.bf16.msrb.mxu0 %v2176_v18 }
  0xa4   : > { %v515_v19 = vpop.permute.xlu0 %514 }
  0xa5   : > { %v3018_v31 = vsel %vm635_vm2, %v2616_v21, %v515_v19  ;;  %v561_v33 = vpop.permute.xlu1 %560  ;;  %v2128_v21 = vor.u32 %v2309_v34, %v2127_v24  ;;  %v2258_v34 = vld [vmem:[%s3652_s2 + $0x14] sm:$0xf]  ;;  %v519_v32 = vpop.permute.xlu2 %518 }
  0xa6   : > { %1219 = vmatmul.bf16.gmra.mxu2 %v3012_v28  ;;  %v3053_v12 = vsel %vm635_vm2, %v2826_v30, %v561_v33  ;;  %v2260_v30 = vld [vmem:[%s3652_s2 + $0x24] sm:$0xf]  ;;  %v619_v33 = vshll.u32 %v3089_v22, 16  ;;  %v1932_v8 = vor.u32 %v2258_v34, %v1929_v40  ;;  %v2318_v40 = vld [vmem:[%s3652_s2 + $0x1f4] sm:$0xf] }
  0xa7   : > { %1199 = vmatmul.bf16.gmra.mxu0 %v3018_v31  ;;  %1338 = vmatpush.bf16.msrb.mxu3 %v2128_v21  ;;  %v1940_v11 = vor.u32 %v2260_v30, %v1937_v62  ;;  %v2305_v21 = vld [vmem:[%s3652_s2 + $0x184] sm:$0xf0]  ;;  %v2044_v30 = vor.u32 %v2286_v56, %v2041_v58 }
  0xa8   : > { %v621_v43 = vrot.slane %v619_v33, 1 }
  0xa9   : > { %1436 = vmatpush.bf16.msrb.mxu1 %v1940_v11  ;;  %1480 = vmatpush.bf16.msra.mxu2 %v2044_v30  ;;  %v585_v11 = vshll.u32 %v3056_v57, 16  ;;  %v2161_v30 = vld [vmem:[%s3652_s2 + $0x1e8] sm:$0xf0] }
  0xaa   : > { %v622_v2 = vor.u32 %v621_v43, %v617_v49  ;;  %v2033_v49 = vld [vmem:[%s3652_s2 + $0xe8] sm:$0xf0] }
  0xab   : > { %1339 = vmatpush.bf16.msrb.mxu3 %v2120_v61  ;;  %v587_v23 = vrot.slane %v585_v11, 1  ;;  %v2089_v11 = vld [vmem:[%s3652_s2 + $0x158] sm:$0xf0] }
  0xac   : > { %v571_v24 = vpop.permute.xlu0 %570  ;;  %v627_v62 = vsel %vm415_vm0, %v622_v2, %v626_v60  ;;  %v2097_v2 = vld [vmem:[%s3652_s2 + $0x168] sm:$0xf0]  ;;  %v2316_v60 = vld [vmem:[%s3652_s2 + $0x1e4] sm:$0xf] }
  0xad   : > { %v517_v10 = vpop.permute.xlu1 %516  ;;  %1437 = vmatpush.bf16.msrb.mxu1 %v1932_v8  ;;  %v3135_v61 = vsel %vm635_vm2, %v2937_v38, %v571_v24  ;;  %630 = vrot.lane.b32.xlu1 %v627_v62, %s2525_s5  ;;  %v3165_v24 = vsel %vm635_vm2, %v2743_v36, %v519_v32  ;;  %v2201_v36 = vld [vmem:[%s3652_s2 + $0x238] sm:$0xf0]  ;;  %v2284_v8 = vld [vmem:[%s3652_s2 + $0xe4] sm:$0xf]  ;;  %v2100_v56 = vor.u32 %v2300_v53, %v2097_v2  ;;  %v2282_v62 = vld [vmem:[%s3652_s2 + $0xd4] sm:$0xf] }
  0xae   : > { %1268 = vmatmul.bf16.gmra.mxu3 %v3048_v54  ;;  %v3100_v19 = vsel %vm635_vm2, %v2645_v45, %v517_v10  ;;  %v2111_v45 = vld [vmem:[%s3652_s2 + $0x180] sm:$0xf]  ;;  %v582_v10 = vrot.slane %v580_v1, 1  ;;  %v2164_v1 = vor.u32 %v2316_v60, %v2161_v30  ;;  %v2280_v32 = vld [vmem:[%s3652_s2 + $0xc4] sm:$0xf] }
  0xaf   : > { %1248 = vmatmul.bf16.gmra.mxu1 %v3053_v12  ;;  %v2112_v51 = vor.u32 %v2305_v21, %v2111_v45  ;;  %v2326_v45 = vld [vmem:[%s3652_s2 + $0x234] sm:$0xf] }
  0xb0   : > { %v583_v18 = vor.u32 %v582_v10, %v578_v3  ;;  %v2204_v50 = vor.u32 %v2326_v45, %v2201_v36  ;;  %v2298_v10 = vld [vmem:[%s3652_s2 + $0x154] sm:$0xf]  ;;  %v2296_v45 = vld [vmem:[%s3652_s2 + $0x144] sm:$0xf] }
  0xb1   : > { %1340 = vmatpush.bf16.msrb.mxu3 %v2112_v51  ;;  %1438 = vmatpush.bf16.msrb.mxu1 %v1924_v55  ;;  %v2036_v51 = vor.u32 %v2284_v8, %v2033_v49  ;;  %v2092_v14 = vor.u32 %v2298_v10, %v2089_v11  ;;  %v2294_v2 = vld [vmem:[%s3652_s2 + $0x134] sm:$0xf]  ;;  %v2276_v11 = vld [vmem:[%s3652_s2 + $0xa4] sm:$0xf] }
  0xb2   : > { %v3155_v33 = vsel %vm415_vm0, %v583_v18, %v587_v23  ;;  %v2324_v18 = vld [vmem:[%s3652_s2 + $0x224] sm:$0xf] }
  0xb3   : > { %628 = vrot.lane.b32.xlu2 %v3155_v33, %s2525_s5  ;;  %1481 = vmatpush.bf16.msra.mxu2 %v2036_v51  ;;  %v2009_v51 = vld [vmem:[%s3652_s2 + $0xb8] sm:$0xf0] }
  0xb4   : > { %v527_v13 = vpop.permute.xlu0 %526 }
  0xb5   : > { %1529 = vmatpush.bf16.msra.mxu3 %v2108_v17  ;;  %v3159_v57 = vsel %vm635_vm2, %v2681_v59, %v527_v13  ;;  %v573_v34 = vpop.permute.xlu1 %572  ;;  %v2169_v59 = vld [vmem:[%s3652_s2 + $0x1f8] sm:$0xf0]  ;;  %1631 = vmatpush.bf16.msra.mxu1 %v2204_v50  ;;  %v595_v13 = vpop.permute.xlu2 %594 }
  0xb6   : > { %1224 = vmatmul.bf16.gmra.mxu2 %v3094_v29  ;;  %v2172_v21 = vor.u32 %v2318_v40, %v2169_v59  ;;  %v3189_v52 = vsel %vm635_vm2, %v3008_v25, %v573_v34  ;;  %v3232_v15 = vsel %vm635_vm2, %v2753_v48, %v595_v13  ;;  %v2153_v17 = vld [vmem:[%s3652_s2 + $0x1d8] sm:$0xf0]  ;;  %v2193_v48 = vld [vmem:[%s3652_s2 + $0x228] sm:$0xf0] }
  0xb7   : > { %1204 = vmatmul.bf16.gmra.mxu0 %v3100_v19  ;;  %v2017_v34 = vld [vmem:[%s3652_s2 + $0xc8] sm:$0xf0]  ;;  %v2196_v40 = vor.u32 %v2324_v18, %v2193_v48  ;;  %v3326_v48 = vld [vmem:[%s3653_s3] sm:$0x3] }
  0xb8   : > { %1578 = vmatpush.bf16.msra.mxu0 %v2172_v21  ;;  %v2020_v59 = vor.u32 %v2280_v32, %v2017_v34  ;;  %v2081_v21 = vld [vmem:[%s3652_s2 + $0x148] sm:$0xf0]  ;;  %3657 = vst [vmem:[#allocation2_spill] sm:$0xff] %v3326_v48 }
  0xb9   : > { %1530 = vmatpush.bf16.msra.mxu3 %v2100_v56  ;;  %1632 = vmatpush.bf16.msra.mxu1 %v2196_v40  ;;  %v2084_v8 = vor.u32 %v2296_v45, %v2081_v21  ;;  %v2001_v13 = vld [vmem:[%s3652_s2 + $0xa8] sm:$0xf0]  ;;  %v3333_v40 = vperm.slane %v3326_v48, 0 }
  0xba   : > { %v2129_v45 = vld [vmem:[%s3652_s2 + $0x1a8] sm:$0xf0] }
  0xbc   : > { %v565_v43 = vpop.permute.xlu0 %564  ;;  %1579 = vmatpush.bf16.msra.mxu0 %v2164_v1  ;;  %v2137_v1 = vld [vmem:[%s3652_s2 + $0x1b8] sm:$0xf0] }
  0xbd   : > { %v3193_v0 = vsel %vm635_vm2, %v2844_v41, %v565_v43  ;;  %v593_v55 = vpop.permute.xlu1 %592  ;;  %1531 = vmatpush.bf16.msra.mxu3 %v2092_v14  ;;  %v2145_v43 = vld [vmem:[%s3652_s2 + $0x1c8] sm:$0xf0]  ;;  %v2004_v14 = vor.u32 %v2276_v11, %v2001_v13  ;;  %v601_v18 = vpop.permute.xlu2 %600  ;;  %v2306_v13 = vld [vmem:[%s3652_s2 + $0x194] sm:$0xf] }
  0xbe   : > { %1273 = vmatmul.bf16.gmra.mxu3 %v3135_v61  ;;  %v3205_v58 = vsel %vm635_vm2, %v2696_v4, %v593_v55  ;;  %v2025_v4 = vld [vmem:[%s3652_s2 + $0xd8] sm:$0xf0]  ;;  %v3330_v32 = vsel %vm635_vm2, %v2648_v46, %v601_v18 }
  0xbf   : > { %1253 = vmatmul.bf16.gmra.mxu1 %v3140_v63  ;;  %v2028_v3 = vor.u32 %v2282_v62, %v2025_v4  ;;  %v2073_v55 = vld [vmem:[%s3652_s2 + $0x138] sm:$0xf0]  ;;  %v2310_v62 = vld [vmem:[%s3652_s2 + $0x1b4] sm:$0xf] }
  0xc0   : > { %v2076_v60 = vor.u32 %v2294_v2, %v2073_v55  ;;  %v2322_v4 = vld [vmem:[%s3652_s2 + $0x214] sm:$0xf]  ;;  %v2057_v55 = vld [vmem:[%s3652_s2 + $0x118] sm:$0xf0] }
  0xc1   : > { %1482 = vmatpush.bf16.msra.mxu2 %v2028_v3  ;;  %1532 = vmatpush.bf16.msra.mxu3 %v2084_v8  ;;  %v2140_v3 = vor.u32 %v2310_v62, %v2137_v1  ;;  %v2290_v2 = vld [vmem:[%s3652_s2 + $0x114] sm:$0xf] }
  0xc4   : > { %v597_v36 = vpop.permute.xlu0 %596 }
  0xc5   : > { %1483 = vmatpush.bf16.msra.mxu2 %v2020_v59  ;;  %v3265_v49 = vsel %vm635_vm2, %v2823_v27, %v597_v36  ;;  %v2278_v27 = vld [vmem:[%s3652_s2 + $0xb4] sm:$0xf]  ;;  %v599_v56 = vpop.permute.xlu1 %598  ;;  %1533 = vmatpush.bf16.msra.mxu3 %v2076_v60  ;;  %v2308_v59 = vld [vmem:[%s3652_s2 + $0x1a4] sm:$0xf]  ;;  %v2060_v60 = vor.u32 %v2290_v2, %v2057_v55  ;;  %v2049_v2 = vld [vmem:[%s3652_s2 + $0x108] sm:$0xf0] }
  0xc6   : > { %1229 = vmatmul.bf16.gmra.mxu2 %v3159_v57  ;;  %v2012_v53 = vor.u32 %v2278_v27, %v2009_v51  ;;  %v3292_v30 = vsel %vm635_vm2, %v2622_v26, %v599_v56  ;;  %v2185_v26 = vld [vmem:[%s3652_s2 + $0x218] sm:$0xf0]  ;;  %v2132_v21 = vor.u32 %v2308_v59, %v2129_v45  ;;  %v2274_v27 = vld [vmem:[%s3652_s2 + $0x94] sm:$0xf] }
  0xc7   : > { %1209 = vmatmul.bf16.gmra.mxu0 %v3165_v24  ;;  %v2188_v10 = vor.u32 %v2322_v4, %v2185_v26  ;;  %v1993_v51 = vld [vmem:[%s3652_s2 + $0x98] sm:$0xf0] }
  0xc9   : > { %1484 = vmatpush.bf16.msra.mxu2 %v2012_v53  ;;  %1633 = vmatpush.bf16.msra.mxu1 %v2188_v10  ;;  %v1996_v53 = vor.u32 %v2274_v27, %v1993_v51  ;;  %v1985_v27 = vld [vmem:[%s3652_s2 + $0x88] sm:$0xf0] }
  0xcc   : > { %v603_v56 = vpop.permute.xlu0 %602 }
  0xcd   : > { %1485 = vmatpush.bf16.msra.mxu2 %v2004_v14  ;;  %v3369_v26 = vsel %vm635_vm2, %v2736_v35, %v603_v56  ;;  %v2121_v14 = vld [vmem:[%s3652_s2 + $0x198] sm:$0xf0]  ;;  %v2320_v35 = vld [vmem:[%s3652_s2 + $0x204] sm:$0xf]  ;;  %v605_v55 = vpop.permute.xlu1 %604 }
  0xce   : > { %1278 = vmatmul.bf16.gmra.mxu3 %v3189_v52 }
  0xcf   : > { %1258 = vmatmul.bf16.gmra.mxu1 %v3193_v0 }
  0xd1   : > { %1486 = vmatpush.bf16.msra.mxu2 %v1996_v53  ;;  %v2288_v53 = vld [vmem:[%s3652_s2 + $0x104] sm:$0xf] }
  0xd2   : > { %v2052_v56 = vor.u32 %v2288_v53, %v2049_v2  ;;  %v632_v2 = vrot.slane %v3089_v22, 1 }
  0xd6   : > { %1292 = vmatmul.bf16.vlgmr.msrb.gmra.mxu2 %v3205_v58 }
  0xd7   : > { %2205 = vmatmul.msk.bf16.vlgmr.msrb.gmra.mxu0 %vm635_vm2, %v2841_v39 }
  0xde   : > { %1341 = vmatmul.bf16.vlgmr.msrb.gmra.mxu3 %v3100_v19 }
  0xdf   : > { %1439 = vmatmul.bf16.vlgmr.msrb.gmra.mxu1 %v2947_v44  ;;  %v2314_v44 = vld [vmem:[%s3652_s2 + $0x1d4] sm:$0xf] }
  0xe0   : > { %v2156_v23 = vor.u32 %v2314_v44, %v2153_v17  ;;  %v2292_v44 = vld [vmem:[%s3652_s2 + $0x124] sm:$0xf]  ;;  %v2065_v17 = vld [vmem:[%s3652_s2 + $0x128] sm:$0xf0] }
  0xe2   : > { %1580 = vmatpush.bf16.msra.mxu0 %v2156_v23  ;;  %v2068_v23 = vor.u32 %v2292_v44, %v2065_v17  ;;  %v2124_v44 = vor.u32 %v2306_v13, %v2121_v14  ;;  %v2177_v17 = vld [vmem:[%s3652_s2 + $0x208] sm:$0xf0] }
  0xe3   : > { %v2180_v59 = vor.u32 %v2320_v35, %v2177_v17  ;;  %v3421_v35 = vsel %vm635_vm2, %v2791_v6, %v605_v55  ;;  %v633_v55 = vrot.slane %v3109_v37, 1 }
  0xe4   : > { %1534 = vmatpush.bf16.msra.mxu3 %v2068_v23 }
  0xe5   : > { %1634 = vmatpush.bf16.msra.mxu1 %v2180_v59 }
  0xe6   : > { %1297 = vmatmul.bf16.gmra.mxu2 %v3232_v15 }
  0xe7   : > { %2206 = vmatmul.msk.bf16.gmra.mxu0 %vm635_vm2, %v2844_v41 }
  0xe8   : > { %1535 = vmatpush.bf16.msra.mxu3 %v2060_v60 }
  0xec   : > { %1536 = vmatpush.bf16.msra.mxu3 %v2052_v56 }
  0xee   : > { %1346 = vmatmul.bf16.gmra.mxu3 %v3165_v24 }
  0xef   : > { %1444 = vmatmul.bf16.gmra.mxu1 %v3018_v31  ;;  %v2312_v31 = vld [vmem:[%s3652_s2 + $0x1c4] sm:$0xf] }
  0xf0   : > { %v2148_v50 = vor.u32 %v2312_v31, %v2145_v43 }
  0xf2   : > { %1581 = vmatpush.bf16.msra.mxu0 %v2148_v50 }
  0xf6   : > { %1302 = vmatmul.bf16.gmra.mxu2 %v3265_v49  ;;  %1582 = vmatpush.bf16.msra.mxu0 %v2140_v3 }
  0xf7   : > { %2207 = vmatmul.msk.bf16.gmra.mxu0 %vm635_vm2, %v2847_v47 }
  0xfa   : > { %1583 = vmatpush.bf16.msra.mxu0 %v2132_v21 }
  0xfe   : > { %1351 = vmatmul.bf16.gmra.mxu3 %v2943_v42  ;;  %1584 = vmatpush.bf16.msra.mxu0 %v2124_v44 }
  0xff   : > { %1449 = vmatmul.bf16.gmra.mxu1 %v3100_v19 }
 0x106   : > { %1307 = vmatmul.bf16.gmra.mxu2 %v3292_v30 }
 0x107   : > { %2208 = vmatmul.msk.bf16.gmra.mxu0 %vm635_vm2, %v2912_v20 }
 0x10e   : > { %1356 = vmatmul.bf16.gmra.mxu3 %v3012_v28 }
 0x10f   : > { %1454 = vmatmul.bf16.gmra.mxu1 %v3165_v24 }
 0x113   : > { %v607_v53 = vpop.permute.xlu0 %606 }
 0x114   : > { %v1195_v34 = vpop.f32.mrf.mxu0 }
 0x115   : > { %v1196_v46 = vadd.f32 %v1195_v34, %v3333_v40 }
 0x116   : > { %1312 = vmatmul.bf16.gmra.mxu2 %v3330_v32 }
 0x117   : > { %2209 = vmatmul.msk.bf16.gmra.mxu0 %vm635_vm2, %v2937_v38 }
 0x119   : > { %v1215_v36 = vpop.f32.mrf.mxu2 }
 0x11a   : > { %v1216_v8 = vadd.f32 %v1215_v36, %v3333_v40 }
 0x11c   : > { %v3346_v31 = vpop.f32.mrf.mxu0  ;;  %v1244_v43 = vpop.f32.mrf.mxu1 }
 0x11d   : > { %v3348_v50 = vadd.f32 %v1244_v43, %v1196_v46  ;;  %v2272_v43 = vld [vmem:[%s3652_s2 + $0x84] sm:$0xf] }
 0x11e   : > { %1361 = vmatmul.bf16.gmra.mxu3 %v3094_v29  ;;  %v1988_v51 = vor.u32 %v2272_v43, %v1985_v27 }
 0x11f   : > { %1459 = vmatmul.bf16.gmra.mxu1 %v2943_v42  ;;  %v631_v37 = vpop.permute.xlu1 %630 }
 0x120   : > { %1487 = vmatpush.bf16.msra.mxu2 %v1988_v51 }
 0x121   : > { %v1217_v62 = vpop.f32.mrf.mxu2  ;;  %v1264_v1 = vpop.f32.mrf.mxu3 }
 0x122   : > { %v1218_v4 = vadd.f32 %v1217_v62, %v3333_v40  ;;  %v3365_v3 = vadd.f32 %v1264_v1, %v1216_v8  ;;  %v2304_v1 = vld [vmem:[%s3652_s2 + $0x184] sm:$0xf] }
 0x124   : > { %v1200_v10 = vpop.f32.mrf.mxu0  ;;  %v3371_v11 = vpop.f32.mrf.mxu1 }
 0x125   : > { %v1201_v18 = vadd.f32 %v1200_v10, %v3333_v40 }
 0x126   : > { %1317 = vmatmul.bf16.gmra.mxu2 %v3369_v26 }
 0x127   : > { %2210 = vmatmul.msk.bf16.gmra.mxu0 %vm635_vm2, %v3008_v25 }
 0x129   : > { %v1220_v23 = vpop.f32.mrf.mxu2  ;;  %v1266_v34 = vpop.f32.mrf.mxu3 }
 0x12a   : > { %v1221_v45 = vadd.f32 %v1220_v23, %v3333_v40  ;;  %v3390_v21 = vadd.f32 %v1266_v34, %v1218_v4  ;;  %v2113_v4 = vld [vmem:[%s3652_s2 + $0x188] sm:$0xf0] }
 0x12b   : > { %v2116_v14 = vor.u32 %v2304_v1, %v2113_v4  ;;  %v3449_v1 = vsel %vm635_vm2, %v3155_v33, %v607_v53 }
 0x12c   : > { %v3392_v46 = vpop.f32.mrf.mxu0  ;;  %v1249_v36 = vpop.f32.mrf.mxu1 }
 0x12d   : > { %v3394_v8 = vadd.f32 %v1249_v36, %v1201_v18  ;;  %1585 = vmatpush.bf16.msra.mxu0 %v2116_v14  ;;  %v629_v18 = vpop.permute.xlu2 %628  ;;  %v3454_v14 = vsel %vm528_vm1, %v632_v2, %v633_v55 }
 0x12e   : > { %1366 = vmatmul.bf16.gmra.mxu3 %v3159_v57  ;;  %v3434_v6 = vsel %vm635_vm2, %v2794_v7, %v629_v18 }
 0x12f   : > { %1464 = vmatmul.bf16.gmra.mxu1 %v3012_v28 }
 0x131   : > { %v1222_v60 = vpop.f32.mrf.mxu2  ;;  %v1269_v62 = vpop.f32.mrf.mxu3 }
 0x132   : > { %v1223_v10 = vadd.f32 %v1222_v60, %v3333_v40  ;;  %v3417_v13 = vadd.f32 %v1269_v62, %v1221_v45 }
 0x134   : > { %v1205_v44 = vpop.f32.mrf.mxu0  ;;  %v3423_v17 = vpop.f32.mrf.mxu1 }
 0x135   : > { %v1206_v23 = vadd.f32 %v1205_v44, %v3333_v40 }
 0x136   : > { %1322 = vmatmul.bf16.gmra.mxu2 %v3421_v35 }
 0x137   : > { %2211 = vmatmul.msk.bf16.gmra.mxu0 %vm635_vm2, %v3086_v16 }
 0x139   : > { %v1225_v34 = vpop.f32.mrf.mxu2  ;;  %v1271_v59 = vpop.f32.mrf.mxu3 }
 0x13a   : > { %v1226_v45 = vadd.f32 %v1225_v34, %v3333_v40  ;;  %v3430_v36 = vadd.f32 %v1271_v59, %v1223_v10  ;;  %v3465_v59 = vsel %vm635_vm2, %v3089_v22, %v631_v37 }
 0x13c   : > { %v3436_v43 = vpop.f32.mrf.mxu0  ;;  %v1254_v27 = vpop.f32.mrf.mxu1 }
 0x13d   : > { %v3438_v51 = vadd.f32 %v1254_v27, %v1206_v23 }
 0x13e   : > { %1371 = vmatmul.bf16.gmra.mxu3 %v3434_v6 }
 0x13f   : > { %1469 = vmatmul.bf16.gmra.mxu1 %v3094_v29 }
 0x141   : > { %v1227_v56 = vpop.f32.mrf.mxu2  ;;  %v1274_v60 = vpop.f32.mrf.mxu3 }
 0x142   : > { %v1228_v62 = vadd.f32 %v1227_v56, %v3333_v40  ;;  %v3445_v7 = vadd.f32 %v1274_v60, %v1226_v45 }
 0x144   : > { %v1210_v4 = vpop.f32.mrf.mxu0  ;;  %v3451_v10 = vpop.f32.mrf.mxu1 }
 0x145   : > { %v1211_v44 = vadd.f32 %v1210_v4, %v3333_v40 }
 0x146   : > { %1327 = vmatmul.bf16.gmra.mxu2 %v3449_v1 }
 0x147   : > { %2212 = vmatmul.msk.bf16.gmra.mxu0 %vm635_vm2, %v3454_v14 }
 0x149   : > { %v1230_v18 = vpop.f32.mrf.mxu2  ;;  %v1276_v23 = vpop.f32.mrf.mxu3 }
 0x14a   : > { %v1231_v34 = vadd.f32 %v1230_v18, %v3333_v40  ;;  %v3461_v33 = vadd.f32 %v1276_v23, %v1228_v62 }
 0x14c   : > { %v3467_v45 = vpop.f32.mrf.mxu0  ;;  %v1259_v27 = vpop.f32.mrf.mxu1 }
 0x14d   : > { %v3469_v53 = vadd.f32 %v1259_v27, %v1211_v44 }
 0x14e   : > { %1376 = vmatmul.bf16.gmra.mxu3 %v3465_v59 }
 0x14f   : > { %1474 = vmatmul.bf16.gmra.mxu1 %v3159_v57 }
 0x151   : > { %v1232_v2 = vpop.f32.mrf.mxu2  ;;  %v1279_v55 = vpop.f32.mrf.mxu3 }
 0x152   : > { %v1233_v56 = vadd.f32 %v1232_v2, %v3333_v40  ;;  %v3474_v60 = vadd.f32 %v1279_v55, %v1231_v34 }
 0x154   : > { %3658 = vst [vmem:[#allocation3_spill] sm:$0xff] %v3474_v60  ;;  %v3476_v62 = vpop.f32.mrf.mxu1  ;;  %v1391_v22 = vpop.f32.mrf.mxu0 }
 0x156   : > { %1488 = vmatmul.bf16.vlgmr.msra.gmra.mxu2 %v2983_v9  ;;  %v1198_v9 = vadd.f32 %v3346_v31, %v3333_v40 }
 0x157   : > { %1586 = vmatmul.bf16.vlgmr.msra.gmra.mxu0 %v3100_v19 }
 0x158   : > { %v1247_v55 = vadd.f32 %v3371_v11, %v1198_v9  ;;  %v1203_v11 = vadd.f32 %v3392_v46, %v3333_v40 }
 0x159   : > { %v1281_v4 = vpop.f32.mrf.mxu3  ;;  %v1293_v37 = vpop.f32.mrf.mxu2 }
 0x15a   : > { %v3480_v44 = vadd.f32 %v1281_v4, %v1233_v56  ;;  %v1294_v56 = vadd.f32 %v1293_v37, %v3348_v50 }
 0x15c   : > { %3659 = vst [vmem:[#allocation4_spill] sm:$0xff] %v3480_v44  ;;  %v1393_v18 = vpop.f32.mrf.mxu0  ;;  %v3482_v23 = vpop.f32.mrf.mxu1 }
 0x15d   : > { %3660 = vst [vmem:[#allocation5_spill] sm:$0xff] %v3482_v23 }
 0x15e   : > { %1537 = vmatmul.bf16.vlgmr.msra.gmra.mxu3 %v3205_v58 }
 0x15f   : > { %2213 = vmatmul.msk.bf16.vlgmr.msra.gmra.mxu1 %vm635_vm2, %v2841_v39 }
 0x161   : > { %v1295_v34 = vpop.f32.mrf.mxu2  ;;  %v1342_v27 = vpop.f32.mrf.mxu3 }
 0x162   : > { %v1296_v39 = vadd.f32 %v1295_v34, %v1247_v55  ;;  %v1343_v58 = vadd.f32 %v1342_v27, %v1294_v56 }
 0x164   : > { %v1396_v19 = vpop.f32.mrf.mxu0  ;;  %v3491_v2 = vpop.f32.mrf.mxu1  ;;  %v1392_v48 = vadd.f32 %v1391_v22, %v1343_v58 }
 0x165   : > { %3661 = vst [vmem:[#allocation6_spill] sm:$0xff] %v3491_v2 }
 0x166   : > { %1493 = vmatmul.bf16.gmra.mxu2 %v3053_v12 }
 0x167   : > { %1591 = vmatmul.bf16.gmra.mxu0 %v3165_v24 }
 0x169   : > { %v1298_v4 = vpop.f32.mrf.mxu2  ;;  %v1344_v23 = vpop.f32.mrf.mxu3 }
 0x16a   : > { %v1345_v31 = vadd.f32 %v1344_v23, %v1296_v39  ;;  %v1299_v23 = vadd.f32 %v1298_v4, %v3394_v8 }
 0x16c   : > { %v1394_v44 = vadd.f32 %v1393_v18, %v1345_v31  ;;  %v1398_v2 = vpop.f32.mrf.mxu0  ;;  %v3498_v60 = vpop.f32.mrf.mxu1  ;;  %v1252_v18 = vadd.f32 %v3423_v17, %v1203_v11 }
 0x16e   : > { %v2331_v12 = vpack.c.bf16 %v1394_v44, %v1392_v48  ;;  %1542 = vmatmul.bf16.gmra.mxu3 %v3232_v15 }
 0x16f   : > { %2214 = vmatmul.msk.bf16.gmra.mxu1 %vm635_vm2, %v2844_v41 }
 0x170   : > { %2332 = vst [vmem:[%s3503_s8] sm:$0xff] %v2331_v12  }
 0x171   : > { %v1300_v24 = vpop.f32.mrf.mxu2  ;;  %v1347_v50 = vpop.f32.mrf.mxu3 }
 0x172   : > { %v1301_v15 = vadd.f32 %v1300_v24, %v1252_v18  ;;  %v1348_v41 = vadd.f32 %v1347_v50, %v1299_v23 }
 0x174   : > { %v1401_v22 = vpop.f32.mrf.mxu0  ;;  %v3511_v37 = vpop.f32.mrf.mxu1  ;;  %v1397_v27 = vadd.f32 %v1396_v19, %v1348_v41 }
 0x176   : > { %1498 = vmatmul.bf16.gmra.mxu2 %v3140_v63 }
 0x177   : > { %1596 = vmatmul.bf16.gmra.mxu0 %v2943_v42  ;;  %v1208_v42 = vadd.f32 %v3436_v43, %v3333_v40 }
 0x179   : > { %v1303_v48 = vpop.f32.mrf.mxu2  ;;  %v1349_v44 = vpop.f32.mrf.mxu3  ;;  %v1257_v19 = vadd.f32 %v3451_v10, %v1208_v42 }
 0x17a   : > { %v1350_v34 = vadd.f32 %v1349_v44, %v1301_v15 }
 0x17c   : > { %v1399_v9 = vadd.f32 %v1398_v2, %v1350_v34  ;;  %v1403_v46 = vpop.f32.mrf.mxu0  ;;  %v3517_v55 = vpop.f32.mrf.mxu1  ;;  %v1304_v2 = vadd.f32 %v1303_v48, %v3438_v51 }
 0x17e   : > { %v2336_v56 = vpack.c.bf16 %v1399_v9, %v1397_v27  ;;  %1547 = vmatmul.bf16.gmra.mxu3 %v3265_v49 }
 0x17f   : > { %2215 = vmatmul.msk.bf16.gmra.mxu1 %vm635_vm2, %v2847_v47 }
 0x180   : > { %2410 = vst [vmem:[%s3503_s8 + $0x10] sm:$0xff] %v2336_v56  }
 0x181   : > { %v1305_v63 = vpop.f32.mrf.mxu2  ;;  %v1352_v8 = vpop.f32.mrf.mxu3 }
 0x182   : > { %v1306_v49 = vadd.f32 %v1305_v63, %v1257_v19  ;;  %v1353_v47 = vadd.f32 %v1352_v8, %v1304_v2 }
 0x184   : > { %v1406_v17 = vpop.f32.mrf.mxu0  ;;  %v3525_v39 = vpop.f32.mrf.mxu1  ;;  %v1402_v12 = vadd.f32 %v1401_v22, %v1353_v47 }
 0x186   : > { %1503 = vmatmul.bf16.gmra.mxu2 %v3193_v0 }
 0x187   : > { %1601 = vmatmul.bf16.gmra.mxu0 %v3012_v28  ;;  %v1213_v28 = vadd.f32 %v3467_v45, %v3333_v40 }
 0x189   : > { %v1308_v58 = vpop.f32.mrf.mxu2  ;;  %v1354_v4 = vpop.f32.mrf.mxu3  ;;  %v1262_v22 = vadd.f32 %v3476_v62, %v1213_v28 }
 0x18a   : > { %v1355_v31 = vadd.f32 %v1354_v4, %v1306_v49  ;;  %v1309_v23 = vadd.f32 %v1308_v58, %v3469_v53 }
 0x18c   : > { %v1404_v24 = vadd.f32 %v1403_v46, %v1355_v31  ;;  %v1408_v43 = vpop.f32.mrf.mxu0  ;;  %v3531_v50 = vpop.f32.mrf.mxu1 }
 0x18e   : > { %v2341_v11 = vpack.c.bf16 %v1404_v24, %v1402_v12  ;;  %1552 = vmatmul.bf16.gmra.mxu3 %v3292_v30 }
 0x18f   : > { %2216 = vmatmul.msk.bf16.gmra.mxu1 %vm635_vm2, %v2912_v20 }
 0x190   : > { %2411 = vst [vmem:[%s3503_s8 + $0x20] sm:$0xff] %v2341_v11  }
 0x191   : > { %v1310_v0 = vpop.f32.mrf.mxu2  ;;  %v1357_v51 = vpop.f32.mrf.mxu3 }
 0x192   : > { %v1311_v30 = vadd.f32 %v1310_v0, %v1262_v22  ;;  %v1358_v20 = vadd.f32 %v1357_v51, %v1309_v23 }
 0x194   : > { %v1411_v10 = vpop.f32.mrf.mxu0  ;;  %v3539_v18 = vpop.f32.mrf.mxu1  ;;  %v1407_v44 = vadd.f32 %v1406_v17, %v1358_v20 }
 0x196   : > { %1508 = vmatmul.bf16.gmra.mxu2 %v2980_v5 }
 0x197   : > { %1606 = vmatmul.bf16.gmra.mxu0 %v3094_v29 }
 0x199   : > { %v1313_v15 = vpop.f32.mrf.mxu2  ;;  %v1359_v41 = vpop.f32.mrf.mxu3 }
 0x19a   : > { %v1360_v48 = vadd.f32 %v1359_v41, %v1311_v30  ;;  %v1314_v9 = vadd.f32 %v1313_v15, %v3365_v3  ;;  %v3662_v41 = vld [vmem:[#allocation3_spill] sm:$0xff] }
 0x19c   : > { %v1409_v34 = vadd.f32 %v1408_v43, %v1360_v48  ;;  %v1413_v40 = vpop.f32.mrf.mxu0  ;;  %v3545_v45 = vpop.f32.mrf.mxu1 }
 0x19e   : > { %v2346_v27 = vpack.c.bf16 %v1409_v34, %v1407_v44  ;;  %1557 = vmatmul.bf16.gmra.mxu3 %v3330_v32  ;;  %v3663_v44 = vld [vmem:[#allocation4_spill] sm:$0xff] }
 0x19f   : > { %2217 = vmatmul.msk.bf16.gmra.mxu1 %vm635_vm2, %v2937_v38 }
 0x1a0   : > { %2412 = vst [vmem:[%s3503_s8 + $0x30] sm:$0xff] %v2346_v27  }
 0x1a1   : > { %v1315_v5 = vpop.f32.mrf.mxu2  ;;  %v1362_v53 = vpop.f32.mrf.mxu3 }
 0x1a2   : > { %v1316_v46 = vadd.f32 %v1315_v5, %v3390_v21  ;;  %v1363_v56 = vadd.f32 %v1362_v53, %v1314_v9 }
 0x1a4   : > { %v1416_v29 = vpop.f32.mrf.mxu0  ;;  %v3551_v62 = vpop.f32.mrf.mxu1  ;;  %v1412_v38 = vadd.f32 %v1411_v10, %v1363_v56 }
 0x1a6   : > { %1513 = vmatmul.bf16.gmra.mxu2 %v3048_v54 }
 0x1a7   : > { %1611 = vmatmul.bf16.gmra.mxu0 %v3159_v57 }
 0x1a9   : > { %v1318_v32 = vpop.f32.mrf.mxu2  ;;  %v1364_v63 = vpop.f32.mrf.mxu3 }
 0x1aa   : > { %v1365_v8 = vadd.f32 %v1364_v63, %v1316_v46  ;;  %v1319_v49 = vadd.f32 %v1318_v32, %v3417_v13 }
 0x1ac   : > { %v1414_v42 = vadd.f32 %v1413_v40, %v1365_v8  ;;  %v1418_v17 = vpop.f32.mrf.mxu0  ;;  %v3557_v19 = vpop.f32.mrf.mxu1 }
 0x1ae   : > { %v2351_v2 = vpack.c.bf16 %v1414_v42, %v1412_v38  ;;  %1562 = vmatmul.bf16.gmra.mxu3 %v3369_v26  ;;  %v3665_v38 = vld [vmem:[#allocation5_spill] sm:$0xff] }
 0x1af   : > { %2218 = vmatmul.msk.bf16.gmra.mxu1 %vm635_vm2, %v3008_v25 }
 0x1b0   : > { %2413 = vst [vmem:[%s3503_s8 + $0x40] sm:$0xff] %v2351_v2  }
 0x1b1   : > { %v1320_v54 = vpop.f32.mrf.mxu2  ;;  %v1367_v57 = vpop.f32.mrf.mxu3 }
 0x1b2   : > { %v1321_v47 = vadd.f32 %v1320_v54, %v3430_v36  ;;  %v1368_v58 = vadd.f32 %v1367_v57, %v1319_v49  ;;  %v3666_v57 = vld [vmem:[#allocation6_spill] sm:$0xff] }
 0x1b4   : > { %v1421_v3 = vpop.f32.mrf.mxu0  ;;  %v3563_v21 = vpop.f32.mrf.mxu1  ;;  %v1417_v25 = vadd.f32 %v1416_v29, %v1368_v58 }
 0x1b6   : > { %1518 = vmatmul.bf16.gmra.mxu2 %v3135_v61 }
 0x1b7   : > { %1616 = vmatmul.bf16.gmra.mxu0 %v3434_v6 }
 0x1b9   : > { %v1323_v26 = vpop.f32.mrf.mxu2  ;;  %v1369_v4 = vpop.f32.mrf.mxu3 }
 0x1ba   : > { %v1370_v31 = vadd.f32 %v1369_v4, %v1321_v47  ;;  %v1324_v0 = vadd.f32 %v1323_v26, %v3445_v7 }
 0x1bc   : > { %v1419_v12 = vadd.f32 %v1418_v17, %v1370_v31  ;;  %v1423_v24 = vpop.f32.mrf.mxu0  ;;  %v3569_v43 = vpop.f32.mrf.mxu1 }
 0x1be   : > { %v2356_v11 = vpack.c.bf16 %v1419_v12, %v1417_v25  ;;  %1567 = vmatmul.bf16.gmra.mxu3 %v3421_v35 }
 0x1bf   : > { %2219 = vmatmul.msk.bf16.gmra.mxu1 %vm635_vm2, %v3086_v16 }
 0x1c0   : > { %2414 = vst [vmem:[%s3503_s8 + $0x50] sm:$0xff] %v2356_v11  }
 0x1c1   : > { %v1325_v61 = vpop.f32.mrf.mxu2  ;;  %v1372_v13 = vpop.f32.mrf.mxu3 }
 0x1c2   : > { %v1326_v51 = vadd.f32 %v1325_v61, %v3461_v33  ;;  %v1373_v28 = vadd.f32 %v1372_v13, %v1324_v0 }
 0x1c4   : > { %v1426_v6 = vpop.f32.mrf.mxu0  ;;  %v3575_v36 = vpop.f32.mrf.mxu1  ;;  %v1422_v16 = vadd.f32 %v1421_v3, %v1373_v28 }
 0x1c6   : > { %1523 = vmatmul.bf16.gmra.mxu2 %v3189_v52 }
 0x1c7   : > { %1621 = vmatmul.bf16.gmra.mxu0 %v3465_v59 }
 0x1c9   : > { %v1328_v35 = vpop.f32.mrf.mxu2  ;;  %v1374_v10 = vpop.f32.mrf.mxu3 }
 0x1ca   : > { %v1375_v22 = vadd.f32 %v1374_v10, %v1326_v51  ;;  %v1329_v48 = vadd.f32 %v1328_v35, %v3662_v41 }
 0x1cc   : > { %v1424_v23 = vadd.f32 %v1423_v24, %v1375_v22  ;;  %v1428_v30 = vpop.f32.mrf.mxu0  ;;  %v3581_v20 = vpop.f32.mrf.mxu1 }
 0x1ce   : > { %v2361_v15 = vpack.c.bf16 %v1424_v23, %v1422_v16  ;;  %1572 = vmatmul.bf16.gmra.mxu3 %v3449_v1 }
 0x1cf   : > { %2220 = vmatmul.msk.bf16.gmra.mxu1 %vm635_vm2, %v3454_v14  ;;  %v3664_v14 = vld [vmem:[#allocation2_spill] sm:$0xff] }
 0x1d0   : > { %2415 = vst [vmem:[%s3503_s8 + $0x60] sm:$0xff] %v2361_v15   ;;  %v3592_v56 = vperm.slane %v3664_v14, 1 }
 0x1d1   : > { %v1330_v52 = vpop.f32.mrf.mxu2  ;;  %v1377_v7 = vpop.f32.mrf.mxu3 }
 0x1d2   : > { %v1331_v34 = vadd.f32 %v1330_v52, %v3663_v44  ;;  %v1378_v40 = vadd.f32 %v1377_v7, %v1329_v48  ;;  %v1441_v42 = vadd.f32 %v3665_v38, %v3592_v56  ;;  %v1443_v3 = vadd.f32 %v3666_v57, %v3592_v56 }
 0x1d3   : > { %v1446_v51 = vadd.f32 %v3498_v60, %v3592_v56  ;;  %v1448_v22 = vadd.f32 %v3511_v37, %v3592_v56 }
 0x1d4   : > { %v3587_v33 = vpop.f32.mrf.mxu1  ;;  %v1587_v59 = vpop.f32.mrf.mxu0  ;;  %v1427_v29 = vadd.f32 %v1426_v6, %v1378_v40 }
 0x1d9   : > { %v1379_v27 = vpop.f32.mrf.mxu3  ;;  %v1489_v5 = vpop.f32.mrf.mxu2 }
 0x1da   : > { %v1380_v53 = vadd.f32 %v1379_v27, %v1331_v34  ;;  %v1490_v17 = vadd.f32 %v1489_v5, %v1441_v42  ;;  %v1451_v5 = vadd.f32 %v3517_v55, %v3592_v56 }
 0x1dc   : > { %v1429_v1 = vadd.f32 %v1428_v30, %v1380_v53  ;;  %v1589_v9 = vpop.f32.mrf.mxu0  ;;  %v1636_v46 = vpop.f32.mrf.mxu1 }
 0x1de   : > { %v2366_v32 = vpack.c.bf16 %v1429_v1, %v1427_v29  ;;  %v1453_v1 = vadd.f32 %v3525_v39, %v3592_v56 }
 0x1e0   : > { %2416 = vst [vmem:[%s3503_s8 + $0x70] sm:$0xff] %v2366_v32  }
 0x1e1   : > { %v1491_v63 = vpop.f32.mrf.mxu2  ;;  %v1538_v8 = vpop.f32.mrf.mxu3 }
 0x1e2   : > { %v1539_v49 = vadd.f32 %v1538_v8, %v1490_v17  ;;  %v1492_v47 = vadd.f32 %v1491_v63, %v1443_v3 }
 0x1e4   : > { %v1592_v2 = vpop.f32.mrf.mxu0  ;;  %v1638_v54 = vpop.f32.mrf.mxu1  ;;  %v1588_v4 = vadd.f32 %v1587_v59, %v1539_v49  ;;  %v1456_v49 = vadd.f32 %v3531_v50, %v3592_v56 }
 0x1e6   : > { %v1637_v11 = vadd.f32 %v1636_v46, %v1588_v4 }
 0x1e9   : > { %v1494_v58 = vpop.f32.mrf.mxu2  ;;  %v1540_v26 = vpop.f32.mrf.mxu3 }
 0x1ea   : > { %v1541_v31 = vadd.f32 %v1540_v26, %v1492_v47  ;;  %v1495_v28 = vadd.f32 %v1494_v58, %v1446_v51  ;;  %v1458_v26 = vadd.f32 %v3539_v18, %v3592_v56 }
 0x1ec   : > { %v1590_v25 = vadd.f32 %v1589_v9, %v1541_v31  ;;  %v1594_v12 = vpop.f32.mrf.mxu0  ;;  %v1641_v24 = vpop.f32.mrf.mxu1 }
 0x1ee   : > { %v1639_v61 = vadd.f32 %v1638_v54, %v1590_v25 }
 0x1f0   : > { %v2371_v13 = vpack.c.bf16 %v1639_v61, %v1637_v11 }
 0x1f1   : > { %v1496_v6 = vpop.f32.mrf.mxu2  ;;  %v1543_v0 = vpop.f32.mrf.mxu3 }
 0x1f2   : > { %2417 = vst [vmem:[%s3503_s8 + $0x8] sm:$0xff] %v2371_v13   ;;  %v1544_v16 = vadd.f32 %v1543_v0, %v1495_v28  ;;  %v1497_v23 = vadd.f32 %v1496_v6, %v1448_v22 }
 0x1f4   : > { %v1597_v35 = vpop.f32.mrf.mxu0  ;;  %v1643_v10 = vpop.f32.mrf.mxu1  ;;  %v1593_v52 = vadd.f32 %v1592_v2, %v1544_v16  ;;  %v1463_v16 = vadd.f32 %v3551_v62, %v3592_v56 }
 0x1f6   : > { %v1642_v44 = vadd.f32 %v1641_v24, %v1593_v52 }
 0x1f9   : > { %v1499_v30 = vpop.f32.mrf.mxu2  ;;  %v1545_v15 = vpop.f32.mrf.mxu3 }
 0x1fa   : > { %v1546_v7 = vadd.f32 %v1545_v15, %v1497_v23  ;;  %v1500_v37 = vadd.f32 %v1499_v30, %v1451_v5  ;;  %v1466_v5 = vadd.f32 %v3557_v19, %v3592_v56 }
 0x1fc   : > { %v1595_v59 = vadd.f32 %v1594_v12, %v1546_v7  ;;  %v1599_v41 = vpop.f32.mrf.mxu0  ;;  %v1646_v48 = vpop.f32.mrf.mxu1 }
 0x1fe   : > { %v1644_v34 = vadd.f32 %v1643_v10, %v1595_v59  ;;  %v1461_v10 = vadd.f32 %v3545_v45, %v3592_v56 }
 0x200   : > { %v2376_v60 = vpack.c.bf16 %v1644_v34, %v1642_v44 }
 0x201   : > { %v1501_v40 = vpop.f32.mrf.mxu2  ;;  %v1548_v27 = vpop.f32.mrf.mxu3 }
 0x202   : > { %2418 = vst [vmem:[%s3503_s8 + $0x18] sm:$0xff] %v2376_v60   ;;  %v1549_v9 = vadd.f32 %v1548_v27, %v1500_v37  ;;  %v1502_v46 = vadd.f32 %v1501_v40, %v1453_v1 }
 0x204   : > { %v1602_v53 = vpop.f32.mrf.mxu0  ;;  %v1648_v29 = vpop.f32.mrf.mxu1  ;;  %v1598_v63 = vadd.f32 %v1597_v35, %v1549_v9 }
 0x206   : > { %v1647_v2 = vadd.f32 %v1646_v48, %v1598_v63 }
 0x209   : > { %v1504_v14 = vpop.f32.mrf.mxu2  ;;  %v1550_v32 = vpop.f32.mrf.mxu3 }
 0x20a   : > { %v1551_v8 = vadd.f32 %v1550_v32, %v1502_v46  ;;  %v1505_v39 = vadd.f32 %v1504_v14, %v1456_v49 }
 0x20c   : > { %v1600_v38 = vadd.f32 %v1599_v41, %v1551_v8  ;;  %v1604_v42 = vpop.f32.mrf.mxu0  ;;  %v1651_v17 = vpop.f32.mrf.mxu1 }
 0x20e   : > { %v1649_v54 = vadd.f32 %v1648_v29, %v1600_v38  ;;  %v1468_v29 = vadd.f32 %v3563_v21, %v3592_v56 }
 0x210   : > { %v2381_v55 = vpack.c.bf16 %v1649_v54, %v1647_v2 }
 0x211   : > { %v1506_v57 = vpop.f32.mrf.mxu2  ;;  %v1553_v3 = vpop.f32.mrf.mxu3 }
 0x212   : > { %2419 = vst [vmem:[%s3503_s8 + $0x28] sm:$0xff] %v2381_v55   ;;  %v1554_v4 = vadd.f32 %v1553_v3, %v1505_v39  ;;  %v1507_v31 = vadd.f32 %v1506_v57, %v1458_v26  ;;  %v1471_v57 = vadd.f32 %v3569_v43, %v3592_v56  ;;  %v1473_v3 = vadd.f32 %v3575_v36, %v3592_v56 }
 0x214   : > { %v1607_v47 = vpop.f32.mrf.mxu0  ;;  %v1653_v58 = vpop.f32.mrf.mxu1  ;;  %v1603_v24 = vadd.f32 %v1602_v53, %v1554_v4 }
 0x216   : > { %v1652_v6 = vadd.f32 %v1651_v17, %v1603_v24 }
 0x219   : > { %v1509_v25 = vpop.f32.mrf.mxu2  ;;  %v1555_v12 = vpop.f32.mrf.mxu3 }
 0x21a   : > { %v1556_v11 = vadd.f32 %v1555_v12, %v1507_v31  ;;  %v1510_v18 = vadd.f32 %v1509_v25, %v1461_v10 }
 0x21c   : > { %v1605_v61 = vadd.f32 %v1604_v42, %v1556_v11  ;;  %v1656_v13 = vpop.f32.mrf.mxu1  ;;  %v1609_v51 = vpop.f32.mrf.mxu0 }
 0x21e   : > { %v1654_v0 = vadd.f32 %v1653_v58, %v1605_v61 }
 0x220   : > { %v2386_v50 = vpack.c.bf16 %v1654_v0, %v1652_v6  ;;  %v1476_v6 = vadd.f32 %v3581_v20, %v3592_v56 }
 0x221   : > { %v1511_v28 = vpop.f32.mrf.mxu2  ;;  %v1558_v35 = vpop.f32.mrf.mxu3 }
 0x222   : > { %2420 = vst [vmem:[%s3503_s8 + $0x38] sm:$0xff] %v2386_v50   ;;  %v1559_v23 = vadd.f32 %v1558_v35, %v1510_v18  ;;  %v1512_v30 = vadd.f32 %v1511_v28, %v1463_v16  ;;  %v1478_v50 = vadd.f32 %v3587_v33, %v3592_v56 }
 0x224   : > { %v1658_v22 = vpop.f32.mrf.mxu1  ;;  %v1612_v15 = vpop.f32.mrf.mxu0  ;;  %v1608_v59 = vadd.f32 %v1607_v47, %v1559_v23 }
 0x226   : > { %v1657_v34 = vadd.f32 %v1656_v13, %v1608_v59 }
 0x229   : > { %v1514_v52 = vpop.f32.mrf.mxu2  ;;  %v1560_v7 = vpop.f32.mrf.mxu3 }
 0x22a   : > { %v1561_v41 = vadd.f32 %v1560_v7, %v1512_v30  ;;  %v1515_v37 = vadd.f32 %v1514_v52, %v1466_v5 }
 0x22c   : > { %v1610_v48 = vadd.f32 %v1609_v51, %v1561_v41  ;;  %v1661_v44 = vpop.f32.mrf.mxu1  ;;  %v1614_v62 = vpop.f32.mrf.mxu0 }
 0x22e   : > { %v1659_v60 = vadd.f32 %v1658_v22, %v1610_v48 }
 0x230   : > { %v2391_v40 = vpack.c.bf16 %v1659_v60, %v1657_v34 }
 0x231   : > { %v1516_v45 = vpop.f32.mrf.mxu2  ;;  %v1563_v27 = vpop.f32.mrf.mxu3 }
 0x232   : > { %2421 = vst [vmem:[%s3503_s8 + $0x48] sm:$0xff] %v2391_v40   ;;  %v1564_v1 = vadd.f32 %v1563_v27, %v1515_v37  ;;  %v1517_v9 = vadd.f32 %v1516_v45, %v1468_v29 }
 0x234   : > { %v1663_v53 = vpop.f32.mrf.mxu1  ;;  %v1613_v32 = vadd.f32 %v1612_v15, %v1564_v1  ;;  %v1617_v38 = vpop.f32.mrf.mxu0 }
 0x236   : > { %v1662_v42 = vadd.f32 %v1661_v44, %v1613_v32 }
 0x239   : > { %v1519_v46 = vpop.f32.mrf.mxu2  ;;  %v1565_v14 = vpop.f32.mrf.mxu3 }
 0x23a   : > { %v1566_v63 = vadd.f32 %v1565_v14, %v1517_v9  ;;  %v1520_v21 = vadd.f32 %v1519_v46, %v1471_v57 }
 0x23c   : > { %v1615_v8 = vadd.f32 %v1614_v62, %v1566_v63  ;;  %v1666_v2 = vpop.f32.mrf.mxu1  ;;  %v1619_v39 = vpop.f32.mrf.mxu0 }
 0x23e   : > { %v1664_v17 = vadd.f32 %v1663_v53, %v1615_v8 }
 0x240   : > { %v2396_v19 = vpack.c.bf16 %v1664_v17, %v1662_v42 }
 0x241   : > { %v1521_v54 = vpop.f32.mrf.mxu2  ;;  %v1568_v55 = vpop.f32.mrf.mxu3 }
 0x242   : > { %2422 = vst [vmem:[%s3503_s8 + $0x58] sm:$0xff] %v2396_v19   ;;  %v1569_v49 = vadd.f32 %v1568_v55, %v1520_v21  ;;  %v1522_v47 = vadd.f32 %v1521_v54, %v1473_v3 }
 0x244   : > { %v1668_v58 = vpop.f32.mrf.mxu1  ;;  %v1618_v4 = vadd.f32 %v1617_v38, %v1569_v49  ;;  %v1622_v13 = vpop.f32.mrf.mxu0 }
 0x246   : > { %v1667_v24 = vadd.f32 %v1666_v2, %v1618_v4 }
 0x249   : > { %v1570_v26 = vpop.f32.mrf.mxu3  ;;  %v1524_v25 = vpop.f32.mrf.mxu2 }
 0x24a   : > { %v1571_v31 = vadd.f32 %v1570_v26, %v1522_v47  ;;  %v1525_v0 = vadd.f32 %v1524_v25, %v1476_v6 }
 0x24c   : > { %v1620_v12 = vadd.f32 %v1619_v39, %v1571_v31  ;;  %v1671_v36 = vpop.f32.mrf.mxu1  ;;  %v1624_v16 = vpop.f32.mrf.mxu0 }
 0x24e   : > { %v1669_v11 = vadd.f32 %v1668_v58, %v1620_v12 }
 0x250   : > { %v2401_v61 = vpack.c.bf16 %v1669_v11, %v1667_v24 }
 0x251   : > { %v1573_v43 = vpop.f32.mrf.mxu3  ;;  %v1526_v51 = vpop.f32.mrf.mxu2 }
 0x252   : > { %2423 = vst [vmem:[%s3503_s8 + $0x68] sm:$0xff] %v2401_v61   ;;  %v1574_v28 = vadd.f32 %v1573_v43, %v1525_v0  ;;  %v1527_v35 = vadd.f32 %v1526_v51, %v1478_v50 }
 0x254   : > { %v1623_v18 = vadd.f32 %v1622_v13, %v1574_v28  ;;  %v1673_v30 = vpop.f32.mrf.mxu1 }
 0x256   : > { %v1672_v15 = vadd.f32 %v1671_v36, %v1623_v18 }
 0x259   : > { %v1575_v10 = vpop.f32.mrf.mxu3 }
 0x25a   : > { %v1576_v22 = vadd.f32 %v1575_v10, %v1527_v35 }
 0x25c   : > { %v1625_v23 = vadd.f32 %v1624_v16, %v1576_v22 }
 0x25e   : > { %v1674_v52 = vadd.f32 %v1673_v30, %v1625_v23 }
 0x260   : > { %v2406_v7 = vpack.c.bf16 %v1674_v52, %v1672_v15 }
 0x262   : > { %2424 = vst [vmem:[%s3503_s8 + $0x78] sm:$0xff] %v2406_v7  }
 0x263 PF: > { %s14_s19 = sadd.s32 1, %s2523_s19   ;;  %s3667_s15 = smov %s2515_s17 }
 0x264   : > { %p11_p9 = scmp.ge.s32.totalorder %s14_s19, 6   ;;  %s3668_s16 = smov %s2519_s18 }
 0x265   : > { %s3669_s17 = smov %s3672_s20  ;;  %s3670_s18 = smov %s3676_s21 }
 0x266   :  { %13 = sbr.rel (!%p11_p9) target bundleno = 3 (0x3), region = 70 }

</bundles_post_ra>
